<compile_context>
chip_gen: v6e
topology: v6e:2x2x1
jax: 0.10.0
libtpu: 0.0.40
codegen_flags: <defaults>
</compile_context>

<pallas_src>
import functools

import jax
import jax.numpy as jnp
import numpy as np
from jax.experimental import pallas as pl
from jax.experimental.pallas import tpu as pltpu


# --------------------------- in-kernel LSTM pieces -------------------------- #

def _project_seq(x, wih, b):
    """Hoisted layer-0 input projection: one (Bb*T, Din) @ (Din, 4H) MXU call.

    Returns a list of T per-timestep (Bb, 4H) gate preactivations.
    """
    Bb, T, Din = x.shape
    p = (jnp.dot(x.reshape(Bb * T, Din), wih,
                 preferred_element_type=jnp.float32) + b).reshape(Bb, T, -1)
    return [p[:, t, :] for t in range(T)]


def _project_steps(hs, wih, b):
    """Per-timestep input projection for layers > 0.

    Keeps the layer-time wavefront: layer l+1 step t depends only on layer l
    step t (no full-sequence barrier between layers).
    """
    return [jnp.dot(h, wih, preferred_element_type=jnp.float32) + b for h in hs]


def _lstm_layer(xp_steps, whh, h0, c0, H, y_ref=None):
    """One LSTM layer, fully unrolled over time.  Gate packing is [i, f, o, g].

    xp_steps: list of T (Bb, 4H) precomputed preactivations (x_t @ W_ih + b).
    Returns (hs, h_T, c_T); hs is the list of per-step hidden states.
    If y_ref (VMEM ref (Bb, T, H)) is given, h_t is also stored there.
    """
    h, c = h0, c0
    hs = []
    for t, xp in enumerate(xp_steps):        # static unroll (T small, static)
        gates = jnp.dot(h, whh, preferred_element_type=jnp.float32) + xp
        sig = jax.nn.sigmoid(gates[:, :3 * H])     # i, f, o in one EUP pass
        i = sig[:, 0 * H:1 * H]
        f = sig[:, 1 * H:2 * H]
        o = sig[:, 2 * H:3 * H]
        g = jnp.tanh(gates[:, 3 * H:4 * H])        # candidate only
        c = f * c + i * g
        h = o * jnp.tanh(c)
        hs.append(h)
        if y_ref is not None:
            y_ref[:, t, :] = h
    return hs, h, c


# ------------------------------ fused kernels ------------------------------- #

def _ae_fused_kernel(L, H, x_ref, *refs):
    """Full Autoencoder forward (hidden=None path): encoder -> decoder -> fc.

    refs layout: enc (wih, whh, b) * L, dec (wih, whh, b) * L, fc_w, fc_b,
                 out_ref, y_scratch.
    """
    y_scr = refs[-1]
    out_ref = refs[-2]
    fc_b = refs[-3][...]
    fc_w = refs[-4][...]
    enc = refs[:3 * L]
    dec = refs[3 * L:6 * L]

    x = x_ref[...]
    Bb, T, _ = x.shape
    z = jnp.zeros((Bb, H), jnp.float32)

    # Issue BOTH layer-0 projections up front; the decoder one overlaps with
    # the latency-bound encoder recurrence on the MXU.
    enc_xp = _project_seq(x, enc[0][...], enc[2][...])
    dec_xp = _project_seq(x, dec[0][...], dec[2][...])

    # ---- encoder (zero initial state); only the final (h, c) are needed ----
    xp = enc_xp
    h_e, c_e = z, z
    for l in range(L):
        hs, h_e, c_e = _lstm_layer(xp, enc[3 * l + 1][...], z, z, H)
        if l + 1 < L:
            xp = _project_steps(hs, enc[3 * (l + 1)][...],
                                enc[3 * (l + 1) + 2][...])

    # ---- decoder, initialised from the encoder final state ----
    # (hidden.repeat(L,1,1) is the identity for L == 1, the only valid case.)
    xp = dec_xp
    for l in range(L):
        last = (l + 1 == L)
        hs, _, _ = _lstm_layer(xp, dec[3 * l + 1][...], h_e, c_e, H,
                               y_scr if last else None)
        if not last:
            xp = _project_steps(hs, dec[3 * (l + 1)][...],
                                dec[3 * (l + 1) + 2][...])

    # ---- decoder fc: one batched matmul over all timesteps ----
    O = fc_w.shape[-1]
    y = y_scr[...]
    pred = (jnp.dot(y.reshape(Bb * T, H), fc_w,
                    preferred_element_type=jnp.float32) + fc_b)
    out_ref[...] = pred.reshape(Bb, T, O)


def _dec_fused_kernel(L, H, x_ref, h0_ref, c0_ref, *refs):
    """Decoder-only forward (explicit hidden path): L-layer LSTM -> fc.

    h0_ref / c0_ref blocks are batch-leading: (Bb, L, H).
    refs layout: dec (wih, whh, b) * L, fc_w, fc_b, out_ref, y_scratch.
    """
    y_scr = refs[-1]
    out_ref = refs[-2]
    fc_b = refs[-3][...]
    fc_w = refs[-4][...]
    dec = refs[:3 * L]

    x = x_ref[...]
    Bb, T, _ = x.shape

    xp = _project_seq(x, dec[0][...], dec[2][...])
    for l in range(L):
        last = (l + 1 == L)
        hs, _, _ = _lstm_layer(xp, dec[3 * l + 1][...],
                               h0_ref[:, l, :], c0_ref[:, l, :], H,
                               y_scr if last else None)
        if not last:
            xp = _project_steps(hs, dec[3 * (l + 1)][...],
                                dec[3 * (l + 1) + 2][...])

    O = fc_w.shape[-1]
    y = y_scr[...]
    pred = (jnp.dot(y.reshape(Bb * T, H), fc_w,
                    preferred_element_type=jnp.float32) + fc_b)
    out_ref[...] = pred.reshape(Bb, T, O)


# ------------------------------ pallas_call wrappers ------------------------ #

def _pick_batch_block(B):
    # Fill the 8 vreg sublanes per block (biggest single lever per the review).
    #   * B <= 8  -> one grid step (no per-step overhead on v5e/v6e single TC)
    #   * B >= 16 -> grid >= 2, so the "parallel" batch axis shards across
    #     v7x's two TensorCores.
    Bb = min(B, 8)
    G = pl.cdiv(B, Bb)
    return Bb, G


def fused_autoencoder_forward(x, enc_params, dec_params, fc_w, fc_b, H):
    B, T, D = x.shape
    L = len(enc_params)
    O = fc_w.shape[-1]
    Bb, G = _pick_batch_block(B)
    Bp = Bb * G
    if Bp != B:                                       # pad batch to a full block
        x = jnp.pad(x, ((0, Bp - B), (0, 0), (0, 0)))
    weights = []
    for p in list(enc_params) + list(dec_params):
        weights += [p["wih"], p["whh"], p["b"]]
    weights += [fc_w, fc_b]
    out = pl.pallas_call(
        functools.partial(_ae_fused_kernel, L, H),
        grid=(G,),
        out_shape=jax.ShapeDtypeStruct((Bp, T, O), jnp.float32),
        in_specs=[pl.BlockSpec((Bb, T, D), lambda b: (b, 0, 0))]
                 + [pl.BlockSpec(w.shape, lambda b: (0, 0)) for w in weights],
        out_specs=pl.BlockSpec((Bb, T, O), lambda b: (b, 0, 0)),
        scratch_shapes=[pltpu.VMEM((Bb, T, H), jnp.float32)],
        compiler_params=pltpu.CompilerParams(dimension_semantics=("parallel",)),
    )(x, *weights)
    return out[:B] if Bp != B else out


def fused_decoder_forward(x, dec_params, fc_w, fc_b, h0_lbh, c0_lbh, H):
    B, T, D = x.shape
    L = len(dec_params)
    O = fc_w.shape[-1]
    Bb, G = _pick_batch_block(B)
    Bp = Bb * G
    # Batch-leading layout for the initial states so the batch grid axis can
    # slice them with full (L, H) trailing blocks.
    h0_blh = jnp.transpose(h0_lbh, (1, 0, 2))          # (B, L, H)
    c0_blh = jnp.transpose(c0_lbh, (1, 0, 2))
    if Bp != B:
        x = jnp.pad(x, ((0, Bp - B), (0, 0), (0, 0)))
        h0_blh = jnp.pad(h0_blh, ((0, Bp - B), (0, 0), (0, 0)))
        c0_blh = jnp.pad(c0_blh, ((0, Bp - B), (0, 0), (0, 0)))
    weights = []
    for p in dec_params:
        weights += [p["wih"], p["whh"], p["b"]]
    weights += [fc_w, fc_b]
    out = pl.pallas_call(
        functools.partial(_dec_fused_kernel, L, H),
        grid=(G,),
        out_shape=jax.ShapeDtypeStruct((Bp, T, O), jnp.float32),
        in_specs=[pl.BlockSpec((Bb, T, D), lambda b: (b, 0, 0)),
                  pl.BlockSpec((Bb, L, H), lambda b: (b, 0, 0)),
                  pl.BlockSpec((Bb, L, H), lambda b: (b, 0, 0))]
                 + [pl.BlockSpec(w.shape, lambda b: (0, 0)) for w in weights],
        out_specs=pl.BlockSpec((Bb, T, O), lambda b: (b, 0, 0)),
        scratch_shapes=[pltpu.VMEM((Bb, T, H), jnp.float32)],
        compiler_params=pltpu.CompilerParams(dimension_semantics=("parallel",)),
    )(x, h0_blh, c0_blh, *weights)
    return out[:B] if Bp != B else out


# ------------------------------ model wrapper ------------------------------- #

def init_lstm_params(key, input_size, hidden_size, num_layers):
    """U(-1/sqrt(H), 1/sqrt(H)) init like PyTorch nn.LSTM.

    Gate columns are packed in [i, f, o, g] order (our internal convention;
    weights are freshly initialised, so no permutation of external weights is
    needed).  Bias is stored combined (b_ih + b_hh) with shape (1, 4H).
    """
    k = 1.0 / np.sqrt(hidden_size)
    params = []
    for l in range(num_layers):
        d = input_size if l == 0 else hidden_size
        key, k1, k2, k3, k4 = jax.random.split(key, 5)
        wih = jax.random.uniform(k1, (d, 4 * hidden_size), jnp.float32, -k, k)
        whh = jax.random.uniform(k2, (hidden_size, 4 * hidden_size),
                                 jnp.float32, -k, k)
        b_ih = jax.random.uniform(k3, (4 * hidden_size,), jnp.float32, -k, k)
        b_hh = jax.random.uniform(k4, (4 * hidden_size,), jnp.float32, -k, k)
        params.append(dict(wih=wih, whh=whh, b=(b_ih + b_hh)[None, :]))
    return key, params


class AutoencoderPallas:
    """Mirrors Autoencoder(inputSize, hiddenSize, layers).forward (eval mode)."""

    def __init__(self, input_size, hidden_size, layers, key):
        self.layers = layers
        self.hidden = hidden_size
        key, self.enc_params = init_lstm_params(key, input_size, hidden_size, layers)
        key, self.dec_params = init_lstm_params(key, input_size, hidden_size, layers)
        k = 1.0 / np.sqrt(hidden_size)
        key, k1, k2 = jax.random.split(key, 3)
        # Decoder.fc = Linear(hiddenSize, outputSize=inputSize); stored as (H, O).
        self.fc_w = jax.random.uniform(k1, (hidden_size, input_size),
                                       jnp.float32, -k, k)
        self.fc_b = jax.random.uniform(k2, (input_size,), jnp.float32, -k, k)[None, :]

    def __call__(self, x, hidden=None):
        B, T, _ = x.shape
        H, L = self.hidden, self.layers
        if hidden is None:
            if L != 1:
                # Matches PyTorch: hidden.repeat(layers,1,1) yields layers**2
                # states, which the layers-layer decoder LSTM rejects.
                raise ValueError(
                    f"Expected hidden[0] size ({L}, {B}, {H}), got ({L * L}, {B}, {H})")
            return fused_autoencoder_forward(x, self.enc_params, self.dec_params,
                                             self.fc_w, self.fc_b, H)
        h, c = hidden
        return fused_decoder_forward(x, self.dec_params, self.fc_w, self.fc_b,
                                     h, c, H)


# ------------------------- pure-JAX reference check ------------------------- #

_HIGHEST = jax.lax.Precision.HIGHEST   # f32-accurate reference matmuls


def _ref_lstm_layer(x, wih, whh, b, h0, c0):
    """Reference layer with the same [i, f, o, g] gate packing."""
    H = h0.shape[-1]
    h, c = h0, c0
    ys = []
    for t in range(x.shape[1]):
        g = (jnp.dot(x[:, t, :], wih, precision=_HIGHEST)
             + jnp.dot(h, whh, precision=_HIGHEST) + b)
        i = jax.nn.sigmoid(g[:, :H])
        f = jax.nn.sigmoid(g[:, H:2 * H])
        o = jax.nn.sigmoid(g[:, 2 * H:3 * H])
        gg = jnp.tanh(g[:, 3 * H:])
        c = f * c + i * gg
        h = o * jnp.tanh(c)
        ys.append(h)
    return jnp.stack(ys, axis=1), h, c


def _ref_stack(x, params, h0, c0):
    hs, cs = [], []
    for l, p in enumerate(params):
        x, hT, cT = _ref_lstm_layer(x, p["wih"], p["whh"], p["b"], h0[l], c0[l])
        hs.append(hT)
        cs.append(cT)
    return x, jnp.stack(hs), jnp.stack(cs)


def reference_forward_auto(model, x):
    B, T, _ = x.shape
    L, H = model.layers, model.hidden
    z0 = jnp.zeros((L, B, H), jnp.float32)
    _, h, c = _ref_stack(x, model.enc_params, z0, z0)
    h = jnp.tile(h, (L, 1, 1))
    c = jnp.tile(c, (L, 1, 1))
    y, _, _ = _ref_stack(x, model.dec_params, h, c)
    return jnp.dot(y, model.fc_w, precision=_HIGHEST) + model.fc_b


def reference_forward_decoder(model, x, h0, c0):
    y, _, _ = _ref_stack(x, model.dec_params, h0, c0)
    return jnp.dot(y, model.fc_w, precision=_HIGHEST) + model.fc_b


# ----------------------------------- main ----------------------------------- #

if __name__ == "__main__":
    B, T = 2, 8
    input_size, hidden_size = 41, 32

    key = jax.random.PRNGKey(0)
    k_params1, k_params2, k_x, k_h, k_c = jax.random.split(key, 5)
    x = jax.random.normal(k_x, (B, T, input_size), dtype=jnp.float32)

    # Path 1: hidden=None -> fused encoder+decoder+fc kernel.  Only shape-valid
    # for layers=1 (PyTorch itself raises for layers>1 due to the repeat).
    model1 = AutoencoderPallas(input_size, hidden_size, 1, k_params1)
    decode1 = jax.block_until_ready(model1(x))
    assert decode1.shape == (B, T, input_size), decode1.shape
    ref1 = reference_forward_auto(model1, x)
    np.testing.assert_allclose(np.asarray(decode1), np.asarray(ref1),
                               rtol=2e-4, atol=2e-4)

    # Path 2: explicit hidden with layers=2 (the module's default `layers`),
    # exercising the fused multi-layer decoder + fc kernel (register wavefront
    # between the two LSTM layers).
    L2 = 2
    model2 = AutoencoderPallas(input_size, hidden_size, L2, k_params2)
    h0 = jax.random.normal(k_h, (L2, B, hidden_size), jnp.float32)
    c0 = jax.random.normal(k_c, (L2, B, hidden_size), jnp.float32)
    decode2 = jax.block_until_ready(model2(x, hidden=(h0, c0)))
    assert decode2.shape == (B, T, input_size), decode2.shape
    ref2 = reference_forward_decoder(model2, x, h0, c0)
    np.testing.assert_allclose(np.asarray(decode2), np.asarray(ref2),
                               rtol=2e-4, atol=2e-4)

    print("KERNEL_OK")
</pallas_src>

<mosaic_0001>
module attributes {stable_mosaic.version = 11 : i64} {
  func.func @_ae_fused_kernel(%arg0: i32, %arg1: memref<2x8x41xf32, #tpu.memory_space<vmem>>, %arg2: memref<41x128xf32, #tpu.memory_space<vmem>>, %arg3: memref<32x128xf32, #tpu.memory_space<vmem>>, %arg4: memref<1x128xf32, #tpu.memory_space<vmem>>, %arg5: memref<41x128xf32, #tpu.memory_space<vmem>>, %arg6: memref<32x128xf32, #tpu.memory_space<vmem>>, %arg7: memref<1x128xf32, #tpu.memory_space<vmem>>, %arg8: memref<32x41xf32, #tpu.memory_space<vmem>>, %arg9: memref<1x41xf32, #tpu.memory_space<vmem>>, %arg10: memref<2x8x41xf32, #tpu.memory_space<vmem>>, %arg11: memref<2x8x32xf32, #tpu.memory_space<vmem>>) attributes {dimension_semantics = [#tpu.dimension_semantics<parallel>], iteration_bounds = array<i64: 1>, scalar_prefetch = 0 : i64, scratch_operands = 1 : i64, tpu.core_type = #tpu.core_type<tc>, window_params = [{transform_indices = @transform_0, window_bounds = array<i64: 2, 8, 41>}, {pipeline_mode = #tpu.pipeline_mode<synchronous>, transform_indices = @transform_1, window_bounds = array<i64: 41, 128>}, {pipeline_mode = #tpu.pipeline_mode<synchronous>, transform_indices = @transform_2, window_bounds = array<i64: 32, 128>}, {pipeline_mode = #tpu.pipeline_mode<synchronous>, transform_indices = @transform_3, window_bounds = array<i64: 1, 128>}, {pipeline_mode = #tpu.pipeline_mode<synchronous>, transform_indices = @transform_4, window_bounds = array<i64: 41, 128>}, {pipeline_mode = #tpu.pipeline_mode<synchronous>, transform_indices = @transform_5, window_bounds = array<i64: 32, 128>}, {pipeline_mode = #tpu.pipeline_mode<synchronous>, transform_indices = @transform_6, window_bounds = array<i64: 1, 128>}, {pipeline_mode = #tpu.pipeline_mode<synchronous>, transform_indices = @transform_7, window_bounds = array<i64: 32, 41>}, {pipeline_mode = #tpu.pipeline_mode<synchronous>, transform_indices = @transform_8, window_bounds = array<i64: 1, 41>}, {transform_indices = @transform_9, window_bounds = array<i64: 2, 8, 41>}]} {
    %c0 = arith.constant 0 : index
    %c0_0 = arith.constant 0 : index
    %0 = vector.load %arg9[%c0, %c0_0] : memref<1x41xf32, #tpu.memory_space<vmem>>, vector<1x41xf32>
    %c0_1 = arith.constant 0 : index
    %c0_2 = arith.constant 0 : index
    %1 = vector.load %arg8[%c0_1, %c0_2] : memref<32x41xf32, #tpu.memory_space<vmem>>, vector<32x41xf32>
    %c0_3 = arith.constant 0 : index
    %c0_4 = arith.constant 0 : index
    %c0_5 = arith.constant 0 : index
    %2 = vector.load %arg1[%c0_3, %c0_4, %c0_5] : memref<2x8x41xf32, #tpu.memory_space<vmem>>, vector<2x8x41xf32>
    %cst = arith.constant 0.000000e+00 : f32
    %3 = vector.broadcast %cst : f32 to vector<2x32xf32>
    %c0_6 = arith.constant 0 : index
    %c0_7 = arith.constant 0 : index
    %4 = vector.load %arg2[%c0_6, %c0_7] : memref<41x128xf32, #tpu.memory_space<vmem>>, vector<41x128xf32>
    %c0_8 = arith.constant 0 : index
    %c0_9 = arith.constant 0 : index
    %5 = vector.load %arg4[%c0_8, %c0_9] : memref<1x128xf32, #tpu.memory_space<vmem>>, vector<1x128xf32>
    %6 = vector.shape_cast %2 : vector<2x8x41xf32> to vector<16x41xf32>
    %cst_10 = arith.constant dense<0.000000e+00> : vector<16x128xf32>
    %7 = tpu.matmul %6, %4, %cst_10 {dimension_numbers = #tpu.dot_dimension_numbers<[1], [0], [0], [1], [0, 0, 1, 1], [], []>} : vector<16x41xf32>, vector<41x128xf32>, vector<16x128xf32> -> vector<16x128xf32>
    %8 = vector.broadcast %5 : vector<1x128xf32> to vector<16x128xf32>
    %9 = arith.addf %7, %8 : vector<16x128xf32>
    %10 = vector.shape_cast %9 : vector<16x128xf32> to vector<2x8x128xf32>
    %11 = vector.extract_strided_slice %10 {offsets = [0, 0, 0], sizes = [2, 1, 128], strides = [1, 1, 1]} : vector<2x8x128xf32> to vector<2x1x128xf32>
    %12 = vector.shape_cast %11 : vector<2x1x128xf32> to vector<2x128xf32>
    %13 = vector.extract_strided_slice %10 {offsets = [0, 1, 0], sizes = [2, 1, 128], strides = [1, 1, 1]} : vector<2x8x128xf32> to vector<2x1x128xf32>
    %14 = vector.shape_cast %13 : vector<2x1x128xf32> to vector<2x128xf32>
    %15 = vector.extract_strided_slice %10 {offsets = [0, 2, 0], sizes = [2, 1, 128], strides = [1, 1, 1]} : vector<2x8x128xf32> to vector<2x1x128xf32>
    %16 = vector.shape_cast %15 : vector<2x1x128xf32> to vector<2x128xf32>
    %17 = vector.extract_strided_slice %10 {offsets = [0, 3, 0], sizes = [2, 1, 128], strides = [1, 1, 1]} : vector<2x8x128xf32> to vector<2x1x128xf32>
    %18 = vector.shape_cast %17 : vector<2x1x128xf32> to vector<2x128xf32>
    %19 = vector.extract_strided_slice %10 {offsets = [0, 4, 0], sizes = [2, 1, 128], strides = [1, 1, 1]} : vector<2x8x128xf32> to vector<2x1x128xf32>
    %20 = vector.shape_cast %19 : vector<2x1x128xf32> to vector<2x128xf32>
    %21 = vector.extract_strided_slice %10 {offsets = [0, 5, 0], sizes = [2, 1, 128], strides = [1, 1, 1]} : vector<2x8x128xf32> to vector<2x1x128xf32>
    %22 = vector.shape_cast %21 : vector<2x1x128xf32> to vector<2x128xf32>
    %23 = vector.extract_strided_slice %10 {offsets = [0, 6, 0], sizes = [2, 1, 128], strides = [1, 1, 1]} : vector<2x8x128xf32> to vector<2x1x128xf32>
    %24 = vector.shape_cast %23 : vector<2x1x128xf32> to vector<2x128xf32>
    %25 = vector.extract_strided_slice %10 {offsets = [0, 7, 0], sizes = [2, 1, 128], strides = [1, 1, 1]} : vector<2x8x128xf32> to vector<2x1x128xf32>
    %26 = vector.shape_cast %25 : vector<2x1x128xf32> to vector<2x128xf32>
    %c0_11 = arith.constant 0 : index
    %c0_12 = arith.constant 0 : index
    %27 = vector.load %arg5[%c0_11, %c0_12] : memref<41x128xf32, #tpu.memory_space<vmem>>, vector<41x128xf32>
    %c0_13 = arith.constant 0 : index
    %c0_14 = arith.constant 0 : index
    %28 = vector.load %arg7[%c0_13, %c0_14] : memref<1x128xf32, #tpu.memory_space<vmem>>, vector<1x128xf32>
    %29 = vector.shape_cast %2 : vector<2x8x41xf32> to vector<16x41xf32>
    %cst_15 = arith.constant dense<0.000000e+00> : vector<16x128xf32>
    %30 = tpu.matmul %29, %27, %cst_15 {dimension_numbers = #tpu.dot_dimension_numbers<[1], [0], [0], [1], [0, 0, 1, 1], [], []>} : vector<16x41xf32>, vector<41x128xf32>, vector<16x128xf32> -> vector<16x128xf32>
    %31 = vector.broadcast %28 : vector<1x128xf32> to vector<16x128xf32>
    %32 = arith.addf %30, %31 : vector<16x128xf32>
    %33 = vector.shape_cast %32 : vector<16x128xf32> to vector<2x8x128xf32>
    %34 = vector.extract_strided_slice %33 {offsets = [0, 0, 0], sizes = [2, 1, 128], strides = [1, 1, 1]} : vector<2x8x128xf32> to vector<2x1x128xf32>
    %35 = vector.shape_cast %34 : vector<2x1x128xf32> to vector<2x128xf32>
    %36 = vector.extract_strided_slice %33 {offsets = [0, 1, 0], sizes = [2, 1, 128], strides = [1, 1, 1]} : vector<2x8x128xf32> to vector<2x1x128xf32>
    %37 = vector.shape_cast %36 : vector<2x1x128xf32> to vector<2x128xf32>
    %38 = vector.extract_strided_slice %33 {offsets = [0, 2, 0], sizes = [2, 1, 128], strides = [1, 1, 1]} : vector<2x8x128xf32> to vector<2x1x128xf32>
    %39 = vector.shape_cast %38 : vector<2x1x128xf32> to vector<2x128xf32>
    %40 = vector.extract_strided_slice %33 {offsets = [0, 3, 0], sizes = [2, 1, 128], strides = [1, 1, 1]} : vector<2x8x128xf32> to vector<2x1x128xf32>
    %41 = vector.shape_cast %40 : vector<2x1x128xf32> to vector<2x128xf32>
    %42 = vector.extract_strided_slice %33 {offsets = [0, 4, 0], sizes = [2, 1, 128], strides = [1, 1, 1]} : vector<2x8x128xf32> to vector<2x1x128xf32>
    %43 = vector.shape_cast %42 : vector<2x1x128xf32> to vector<2x128xf32>
    %44 = vector.extract_strided_slice %33 {offsets = [0, 5, 0], sizes = [2, 1, 128], strides = [1, 1, 1]} : vector<2x8x128xf32> to vector<2x1x128xf32>
    %45 = vector.shape_cast %44 : vector<2x1x128xf32> to vector<2x128xf32>
    %46 = vector.extract_strided_slice %33 {offsets = [0, 6, 0], sizes = [2, 1, 128], strides = [1, 1, 1]} : vector<2x8x128xf32> to vector<2x1x128xf32>
    %47 = vector.shape_cast %46 : vector<2x1x128xf32> to vector<2x128xf32>
    %48 = vector.extract_strided_slice %33 {offsets = [0, 7, 0], sizes = [2, 1, 128], strides = [1, 1, 1]} : vector<2x8x128xf32> to vector<2x1x128xf32>
    %49 = vector.shape_cast %48 : vector<2x1x128xf32> to vector<2x128xf32>
    %c0_16 = arith.constant 0 : index
    %c0_17 = arith.constant 0 : index
    %50 = vector.load %arg3[%c0_16, %c0_17] : memref<32x128xf32, #tpu.memory_space<vmem>>, vector<32x128xf32>
    %cst_18 = arith.constant dense<0.000000e+00> : vector<2x128xf32>
    %51 = tpu.matmul %3, %50, %cst_18 {dimension_numbers = #tpu.dot_dimension_numbers<[1], [0], [0], [1], [0, 0, 1, 1], [], []>} : vector<2x32xf32>, vector<32x128xf32>, vector<2x128xf32> -> vector<2x128xf32>
    %52 = arith.addf %51, %12 : vector<2x128xf32>
    %53 = vector.extract_strided_slice %52 {offsets = [0, 0], sizes = [2, 96], strides = [1, 1]} : vector<2x128xf32> to vector<2x96xf32>
    %54 = arith.negf %53 : vector<2x96xf32>
    %55 = math.exp %54 : vector<2x96xf32>
    %cst_19 = arith.constant 1.000000e+00 : f32
    %56 = vector.broadcast %cst_19 : f32 to vector<2x96xf32>
    %57 = arith.addf %56, %55 : vector<2x96xf32>
    %58 = arith.divf %56, %57 : vector<2x96xf32>
    %59 = vector.extract_strided_slice %58 {offsets = [0, 0], sizes = [2, 32], strides = [1, 1]} : vector<2x96xf32> to vector<2x32xf32>
    %60 = vector.extract_strided_slice %58 {offsets = [0, 32], sizes = [2, 32], strides = [1, 1]} : vector<2x96xf32> to vector<2x32xf32>
    %61 = vector.extract_strided_slice %58 {offsets = [0, 64], sizes = [2, 32], strides = [1, 1]} : vector<2x96xf32> to vector<2x32xf32>
    %62 = vector.extract_strided_slice %52 {offsets = [0, 96], sizes = [2, 32], strides = [1, 1]} : vector<2x128xf32> to vector<2x32xf32>
    %63 = math.tanh %62 : vector<2x32xf32>
    %64 = arith.mulf %60, %3 : vector<2x32xf32>
    %65 = arith.mulf %59, %63 : vector<2x32xf32>
    %66 = arith.addf %64, %65 : vector<2x32xf32>
    %67 = math.tanh %66 : vector<2x32xf32>
    %68 = arith.mulf %61, %67 : vector<2x32xf32>
    %cst_20 = arith.constant dense<0.000000e+00> : vector<2x128xf32>
    %69 = tpu.matmul %68, %50, %cst_20 {dimension_numbers = #tpu.dot_dimension_numbers<[1], [0], [0], [1], [0, 0, 1, 1], [], []>} : vector<2x32xf32>, vector<32x128xf32>, vector<2x128xf32> -> vector<2x128xf32>
    %70 = arith.addf %69, %14 : vector<2x128xf32>
    %71 = vector.extract_strided_slice %70 {offsets = [0, 0], sizes = [2, 96], strides = [1, 1]} : vector<2x128xf32> to vector<2x96xf32>
    %72 = arith.negf %71 : vector<2x96xf32>
    %73 = math.exp %72 : vector<2x96xf32>
    %cst_21 = arith.constant 1.000000e+00 : f32
    %74 = vector.broadcast %cst_21 : f32 to vector<2x96xf32>
    %75 = arith.addf %74, %73 : vector<2x96xf32>
    %76 = arith.divf %74, %75 : vector<2x96xf32>
    %77 = vector.extract_strided_slice %76 {offsets = [0, 0], sizes = [2, 32], strides = [1, 1]} : vector<2x96xf32> to vector<2x32xf32>
    %78 = vector.extract_strided_slice %76 {offsets = [0, 32], sizes = [2, 32], strides = [1, 1]} : vector<2x96xf32> to vector<2x32xf32>
    %79 = vector.extract_strided_slice %76 {offsets = [0, 64], sizes = [2, 32], strides = [1, 1]} : vector<2x96xf32> to vector<2x32xf32>
    %80 = vector.extract_strided_slice %70 {offsets = [0, 96], sizes = [2, 32], strides = [1, 1]} : vector<2x128xf32> to vector<2x32xf32>
    %81 = math.tanh %80 : vector<2x32xf32>
    %82 = arith.mulf %78, %66 : vector<2x32xf32>
    %83 = arith.mulf %77, %81 : vector<2x32xf32>
    %84 = arith.addf %82, %83 : vector<2x32xf32>
    %85 = math.tanh %84 : vector<2x32xf32>
    %86 = arith.mulf %79, %85 : vector<2x32xf32>
    %cst_22 = arith.constant dense<0.000000e+00> : vector<2x128xf32>
    %87 = tpu.matmul %86, %50, %cst_22 {dimension_numbers = #tpu.dot_dimension_numbers<[1], [0], [0], [1], [0, 0, 1, 1], [], []>} : vector<2x32xf32>, vector<32x128xf32>, vector<2x128xf32> -> vector<2x128xf32>
    %88 = arith.addf %87, %16 : vector<2x128xf32>
    %89 = vector.extract_strided_slice %88 {offsets = [0, 0], sizes = [2, 96], strides = [1, 1]} : vector<2x128xf32> to vector<2x96xf32>
    %90 = arith.negf %89 : vector<2x96xf32>
    %91 = math.exp %90 : vector<2x96xf32>
    %cst_23 = arith.constant 1.000000e+00 : f32
    %92 = vector.broadcast %cst_23 : f32 to vector<2x96xf32>
    %93 = arith.addf %92, %91 : vector<2x96xf32>
    %94 = arith.divf %92, %93 : vector<2x96xf32>
    %95 = vector.extract_strided_slice %94 {offsets = [0, 0], sizes = [2, 32], strides = [1, 1]} : vector<2x96xf32> to vector<2x32xf32>
    %96 = vector.extract_strided_slice %94 {offsets = [0, 32], sizes = [2, 32], strides = [1, 1]} : vector<2x96xf32> to vector<2x32xf32>
    %97 = vector.extract_strided_slice %94 {offsets = [0, 64], sizes = [2, 32], strides = [1, 1]} : vector<2x96xf32> to vector<2x32xf32>
    %98 = vector.extract_strided_slice %88 {offsets = [0, 96], sizes = [2, 32], strides = [1, 1]} : vector<2x128xf32> to vector<2x32xf32>
    %99 = math.tanh %98 : vector<2x32xf32>
    %100 = arith.mulf %96, %84 : vector<2x32xf32>
    %101 = arith.mulf %95, %99 : vector<2x32xf32>
    %102 = arith.addf %100, %101 : vector<2x32xf32>
    %103 = math.tanh %102 : vector<2x32xf32>
    %104 = arith.mulf %97, %103 : vector<2x32xf32>
    %cst_24 = arith.constant dense<0.000000e+00> : vector<2x128xf32>
    %105 = tpu.matmul %104, %50, %cst_24 {dimension_numbers = #tpu.dot_dimension_numbers<[1], [0], [0], [1], [0, 0, 1, 1], [], []>} : vector<2x32xf32>, vector<32x128xf32>, vector<2x128xf32> -> vector<2x128xf32>
    %106 = arith.addf %105, %18 : vector<2x128xf32>
    %107 = vector.extract_strided_slice %106 {offsets = [0, 0], sizes = [2, 96], strides = [1, 1]} : vector<2x128xf32> to vector<2x96xf32>
    %108 = arith.negf %107 : vector<2x96xf32>
    %109 = math.exp %108 : vector<2x96xf32>
    %cst_25 = arith.constant 1.000000e+00 : f32
    %110 = vector.broadcast %cst_25 : f32 to vector<2x96xf32>
    %111 = arith.addf %110, %109 : vector<2x96xf32>
    %112 = arith.divf %110, %111 : vector<2x96xf32>
    %113 = vector.extract_strided_slice %112 {offsets = [0, 0], sizes = [2, 32], strides = [1, 1]} : vector<2x96xf32> to vector<2x32xf32>
    %114 = vector.extract_strided_slice %112 {offsets = [0, 32], sizes = [2, 32], strides = [1, 1]} : vector<2x96xf32> to vector<2x32xf32>
    %115 = vector.extract_strided_slice %112 {offsets = [0, 64], sizes = [2, 32], strides = [1, 1]} : vector<2x96xf32> to vector<2x32xf32>
    %116 = vector.extract_strided_slice %106 {offsets = [0, 96], sizes = [2, 32], strides = [1, 1]} : vector<2x128xf32> to vector<2x32xf32>
    %117 = math.tanh %116 : vector<2x32xf32>
    %118 = arith.mulf %114, %102 : vector<2x32xf32>
    %119 = arith.mulf %113, %117 : vector<2x32xf32>
    %120 = arith.addf %118, %119 : vector<2x32xf32>
    %121 = math.tanh %120 : vector<2x32xf32>
    %122 = arith.mulf %115, %121 : vector<2x32xf32>
    %cst_26 = arith.constant dense<0.000000e+00> : vector<2x128xf32>
    %123 = tpu.matmul %122, %50, %cst_26 {dimension_numbers = #tpu.dot_dimension_numbers<[1], [0], [0], [1], [0, 0, 1, 1], [], []>} : vector<2x32xf32>, vector<32x128xf32>, vector<2x128xf32> -> vector<2x128xf32>
    %124 = arith.addf %123, %20 : vector<2x128xf32>
    %125 = vector.extract_strided_slice %124 {offsets = [0, 0], sizes = [2, 96], strides = [1, 1]} : vector<2x128xf32> to vector<2x96xf32>
    %126 = arith.negf %125 : vector<2x96xf32>
    %127 = math.exp %126 : vector<2x96xf32>
    %cst_27 = arith.constant 1.000000e+00 : f32
    %128 = vector.broadcast %cst_27 : f32 to vector<2x96xf32>
    %129 = arith.addf %128, %127 : vector<2x96xf32>
    %130 = arith.divf %128, %129 : vector<2x96xf32>
    %131 = vector.extract_strided_slice %130 {offsets = [0, 0], sizes = [2, 32], strides = [1, 1]} : vector<2x96xf32> to vector<2x32xf32>
    %132 = vector.extract_strided_slice %130 {offsets = [0, 32], sizes = [2, 32], strides = [1, 1]} : vector<2x96xf32> to vector<2x32xf32>
    %133 = vector.extract_strided_slice %130 {offsets = [0, 64], sizes = [2, 32], strides = [1, 1]} : vector<2x96xf32> to vector<2x32xf32>
    %134 = vector.extract_strided_slice %124 {offsets = [0, 96], sizes = [2, 32], strides = [1, 1]} : vector<2x128xf32> to vector<2x32xf32>
    %135 = math.tanh %134 : vector<2x32xf32>
    %136 = arith.mulf %132, %120 : vector<2x32xf32>
    %137 = arith.mulf %131, %135 : vector<2x32xf32>
    %138 = arith.addf %136, %137 : vector<2x32xf32>
    %139 = math.tanh %138 : vector<2x32xf32>
    %140 = arith.mulf %133, %139 : vector<2x32xf32>
    %cst_28 = arith.constant dense<0.000000e+00> : vector<2x128xf32>
    %141 = tpu.matmul %140, %50, %cst_28 {dimension_numbers = #tpu.dot_dimension_numbers<[1], [0], [0], [1], [0, 0, 1, 1], [], []>} : vector<2x32xf32>, vector<32x128xf32>, vector<2x128xf32> -> vector<2x128xf32>
    %142 = arith.addf %141, %22 : vector<2x128xf32>
    %143 = vector.extract_strided_slice %142 {offsets = [0, 0], sizes = [2, 96], strides = [1, 1]} : vector<2x128xf32> to vector<2x96xf32>
    %144 = arith.negf %143 : vector<2x96xf32>
    %145 = math.exp %144 : vector<2x96xf32>
    %cst_29 = arith.constant 1.000000e+00 : f32
    %146 = vector.broadcast %cst_29 : f32 to vector<2x96xf32>
    %147 = arith.addf %146, %145 : vector<2x96xf32>
    %148 = arith.divf %146, %147 : vector<2x96xf32>
    %149 = vector.extract_strided_slice %148 {offsets = [0, 0], sizes = [2, 32], strides = [1, 1]} : vector<2x96xf32> to vector<2x32xf32>
    %150 = vector.extract_strided_slice %148 {offsets = [0, 32], sizes = [2, 32], strides = [1, 1]} : vector<2x96xf32> to vector<2x32xf32>
    %151 = vector.extract_strided_slice %148 {offsets = [0, 64], sizes = [2, 32], strides = [1, 1]} : vector<2x96xf32> to vector<2x32xf32>
    %152 = vector.extract_strided_slice %142 {offsets = [0, 96], sizes = [2, 32], strides = [1, 1]} : vector<2x128xf32> to vector<2x32xf32>
    %153 = math.tanh %152 : vector<2x32xf32>
    %154 = arith.mulf %150, %138 : vector<2x32xf32>
    %155 = arith.mulf %149, %153 : vector<2x32xf32>
    %156 = arith.addf %154, %155 : vector<2x32xf32>
    %157 = math.tanh %156 : vector<2x32xf32>
    %158 = arith.mulf %151, %157 : vector<2x32xf32>
    %cst_30 = arith.constant dense<0.000000e+00> : vector<2x128xf32>
    %159 = tpu.matmul %158, %50, %cst_30 {dimension_numbers = #tpu.dot_dimension_numbers<[1], [0], [0], [1], [0, 0, 1, 1], [], []>} : vector<2x32xf32>, vector<32x128xf32>, vector<2x128xf32> -> vector<2x128xf32>
    %160 = arith.addf %159, %24 : vector<2x128xf32>
    %161 = vector.extract_strided_slice %160 {offsets = [0, 0], sizes = [2, 96], strides = [1, 1]} : vector<2x128xf32> to vector<2x96xf32>
    %162 = arith.negf %161 : vector<2x96xf32>
    %163 = math.exp %162 : vector<2x96xf32>
    %cst_31 = arith.constant 1.000000e+00 : f32
    %164 = vector.broadcast %cst_31 : f32 to vector<2x96xf32>
    %165 = arith.addf %164, %163 : vector<2x96xf32>
    %166 = arith.divf %164, %165 : vector<2x96xf32>
    %167 = vector.extract_strided_slice %166 {offsets = [0, 0], sizes = [2, 32], strides = [1, 1]} : vector<2x96xf32> to vector<2x32xf32>
    %168 = vector.extract_strided_slice %166 {offsets = [0, 32], sizes = [2, 32], strides = [1, 1]} : vector<2x96xf32> to vector<2x32xf32>
    %169 = vector.extract_strided_slice %166 {offsets = [0, 64], sizes = [2, 32], strides = [1, 1]} : vector<2x96xf32> to vector<2x32xf32>
    %170 = vector.extract_strided_slice %160 {offsets = [0, 96], sizes = [2, 32], strides = [1, 1]} : vector<2x128xf32> to vector<2x32xf32>
    %171 = math.tanh %170 : vector<2x32xf32>
    %172 = arith.mulf %168, %156 : vector<2x32xf32>
    %173 = arith.mulf %167, %171 : vector<2x32xf32>
    %174 = arith.addf %172, %173 : vector<2x32xf32>
    %175 = math.tanh %174 : vector<2x32xf32>
    %176 = arith.mulf %169, %175 : vector<2x32xf32>
    %cst_32 = arith.constant dense<0.000000e+00> : vector<2x128xf32>
    %177 = tpu.matmul %176, %50, %cst_32 {dimension_numbers = #tpu.dot_dimension_numbers<[1], [0], [0], [1], [0, 0, 1, 1], [], []>} : vector<2x32xf32>, vector<32x128xf32>, vector<2x128xf32> -> vector<2x128xf32>
    %178 = arith.addf %177, %26 : vector<2x128xf32>
    %179 = vector.extract_strided_slice %178 {offsets = [0, 0], sizes = [2, 96], strides = [1, 1]} : vector<2x128xf32> to vector<2x96xf32>
    %180 = arith.negf %179 : vector<2x96xf32>
    %181 = math.exp %180 : vector<2x96xf32>
    %cst_33 = arith.constant 1.000000e+00 : f32
    %182 = vector.broadcast %cst_33 : f32 to vector<2x96xf32>
    %183 = arith.addf %182, %181 : vector<2x96xf32>
    %184 = arith.divf %182, %183 : vector<2x96xf32>
    %185 = vector.extract_strided_slice %184 {offsets = [0, 0], sizes = [2, 32], strides = [1, 1]} : vector<2x96xf32> to vector<2x32xf32>
    %186 = vector.extract_strided_slice %184 {offsets = [0, 32], sizes = [2, 32], strides = [1, 1]} : vector<2x96xf32> to vector<2x32xf32>
    %187 = vector.extract_strided_slice %184 {offsets = [0, 64], sizes = [2, 32], strides = [1, 1]} : vector<2x96xf32> to vector<2x32xf32>
    %188 = vector.extract_strided_slice %178 {offsets = [0, 96], sizes = [2, 32], strides = [1, 1]} : vector<2x128xf32> to vector<2x32xf32>
    %189 = math.tanh %188 : vector<2x32xf32>
    %190 = arith.mulf %186, %174 : vector<2x32xf32>
    %191 = arith.mulf %185, %189 : vector<2x32xf32>
    %192 = arith.addf %190, %191 : vector<2x32xf32>
    %193 = math.tanh %192 : vector<2x32xf32>
    %194 = arith.mulf %187, %193 : vector<2x32xf32>
    %c0_34 = arith.constant 0 : index
    %c0_35 = arith.constant 0 : index
    %195 = vector.load %arg6[%c0_34, %c0_35] : memref<32x128xf32, #tpu.memory_space<vmem>>, vector<32x128xf32>
    %cst_36 = arith.constant dense<0.000000e+00> : vector<2x128xf32>
    %196 = tpu.matmul %194, %195, %cst_36 {dimension_numbers = #tpu.dot_dimension_numbers<[1], [0], [0], [1], [0, 0, 1, 1], [], []>} : vector<2x32xf32>, vector<32x128xf32>, vector<2x128xf32> -> vector<2x128xf32>
    %197 = arith.addf %196, %35 : vector<2x128xf32>
    %198 = vector.extract_strided_slice %197 {offsets = [0, 0], sizes = [2, 96], strides = [1, 1]} : vector<2x128xf32> to vector<2x96xf32>
    %199 = arith.negf %198 : vector<2x96xf32>
    %200 = math.exp %199 : vector<2x96xf32>
    %cst_37 = arith.constant 1.000000e+00 : f32
    %201 = vector.broadcast %cst_37 : f32 to vector<2x96xf32>
    %202 = arith.addf %201, %200 : vector<2x96xf32>
    %203 = arith.divf %201, %202 : vector<2x96xf32>
    %204 = vector.extract_strided_slice %203 {offsets = [0, 0], sizes = [2, 32], strides = [1, 1]} : vector<2x96xf32> to vector<2x32xf32>
    %205 = vector.extract_strided_slice %203 {offsets = [0, 32], sizes = [2, 32], strides = [1, 1]} : vector<2x96xf32> to vector<2x32xf32>
    %206 = vector.extract_strided_slice %203 {offsets = [0, 64], sizes = [2, 32], strides = [1, 1]} : vector<2x96xf32> to vector<2x32xf32>
    %207 = vector.extract_strided_slice %197 {offsets = [0, 96], sizes = [2, 32], strides = [1, 1]} : vector<2x128xf32> to vector<2x32xf32>
    %208 = math.tanh %207 : vector<2x32xf32>
    %209 = arith.mulf %205, %192 : vector<2x32xf32>
    %210 = arith.mulf %204, %208 : vector<2x32xf32>
    %211 = arith.addf %209, %210 : vector<2x32xf32>
    %212 = math.tanh %211 : vector<2x32xf32>
    %213 = arith.mulf %206, %212 : vector<2x32xf32>
    %c0_38 = arith.constant 0 : index
    %c0_39 = arith.constant 0 : index
    %c0_40 = arith.constant 0 : index
    %214 = vector.load %arg11[%c0_38, %c0_39, %c0_40] : memref<2x8x32xf32, #tpu.memory_space<vmem>>, vector<2x1x32xf32>
    %215 = vector.shape_cast %214 : vector<2x1x32xf32> to vector<2x32xf32>
    %216 = vector.shape_cast %213 : vector<2x32xf32> to vector<2x1x32xf32>
    tpu.vector_store %arg11[%c0_38, %c0_39, %c0_40], %216 {strides = array<i32>} : memref<2x8x32xf32, #tpu.memory_space<vmem>>, vector<2x1x32xf32>,
    %cst_41 = arith.constant dense<0.000000e+00> : vector<2x128xf32>
    %217 = tpu.matmul %213, %195, %cst_41 {dimension_numbers = #tpu.dot_dimension_numbers<[1], [0], [0], [1], [0, 0, 1, 1], [], []>} : vector<2x32xf32>, vector<32x128xf32>, vector<2x128xf32> -> vector<2x128xf32>
    %218 = arith.addf %217, %37 : vector<2x128xf32>
    %219 = vector.extract_strided_slice %218 {offsets = [0, 0], sizes = [2, 96], strides = [1, 1]} : vector<2x128xf32> to vector<2x96xf32>
    %220 = arith.negf %219 : vector<2x96xf32>
    %221 = math.exp %220 : vector<2x96xf32>
    %cst_42 = arith.constant 1.000000e+00 : f32
    %222 = vector.broadcast %cst_42 : f32 to vector<2x96xf32>
    %223 = arith.addf %222, %221 : vector<2x96xf32>
    %224 = arith.divf %222, %223 : vector<2x96xf32>
    %225 = vector.extract_strided_slice %224 {offsets = [0, 0], sizes = [2, 32], strides = [1, 1]} : vector<2x96xf32> to vector<2x32xf32>
    %226 = vector.extract_strided_slice %224 {offsets = [0, 32], sizes = [2, 32], strides = [1, 1]} : vector<2x96xf32> to vector<2x32xf32>
    %227 = vector.extract_strided_slice %224 {offsets = [0, 64], sizes = [2, 32], strides = [1, 1]} : vector<2x96xf32> to vector<2x32xf32>
    %228 = vector.extract_strided_slice %218 {offsets = [0, 96], sizes = [2, 32], strides = [1, 1]} : vector<2x128xf32> to vector<2x32xf32>
    %229 = math.tanh %228 : vector<2x32xf32>
    %230 = arith.mulf %226, %211 : vector<2x32xf32>
    %231 = arith.mulf %225, %229 : vector<2x32xf32>
    %232 = arith.addf %230, %231 : vector<2x32xf32>
    %233 = math.tanh %232 : vector<2x32xf32>
    %234 = arith.mulf %227, %233 : vector<2x32xf32>
    %c0_43 = arith.constant 0 : index
    %c1 = arith.constant 1 : index
    %c0_44 = arith.constant 0 : index
    %235 = vector.load %arg11[%c0_43, %c1, %c0_44] : memref<2x8x32xf32, #tpu.memory_space<vmem>>, vector<2x1x32xf32>
    %236 = vector.shape_cast %235 : vector<2x1x32xf32> to vector<2x32xf32>
    %237 = vector.shape_cast %234 : vector<2x32xf32> to vector<2x1x32xf32>
    tpu.vector_store %arg11[%c0_43, %c1, %c0_44], %237 {strides = array<i32>} : memref<2x8x32xf32, #tpu.memory_space<vmem>>, vector<2x1x32xf32>,
    %cst_45 = arith.constant dense<0.000000e+00> : vector<2x128xf32>
    %238 = tpu.matmul %234, %195, %cst_45 {dimension_numbers = #tpu.dot_dimension_numbers<[1], [0], [0], [1], [0, 0, 1, 1], [], []>} : vector<2x32xf32>, vector<32x128xf32>, vector<2x128xf32> -> vector<2x128xf32>
    %239 = arith.addf %238, %39 : vector<2x128xf32>
    %240 = vector.extract_strided_slice %239 {offsets = [0, 0], sizes = [2, 96], strides = [1, 1]} : vector<2x128xf32> to vector<2x96xf32>
    %241 = arith.negf %240 : vector<2x96xf32>
    %242 = math.exp %241 : vector<2x96xf32>
    %cst_46 = arith.constant 1.000000e+00 : f32
    %243 = vector.broadcast %cst_46 : f32 to vector<2x96xf32>
    %244 = arith.addf %243, %242 : vector<2x96xf32>
    %245 = arith.divf %243, %244 : vector<2x96xf32>
    %246 = vector.extract_strided_slice %245 {offsets = [0, 0], sizes = [2, 32], strides = [1, 1]} : vector<2x96xf32> to vector<2x32xf32>
    %247 = vector.extract_strided_slice %245 {offsets = [0, 32], sizes = [2, 32], strides = [1, 1]} : vector<2x96xf32> to vector<2x32xf32>
    %248 = vector.extract_strided_slice %245 {offsets = [0, 64], sizes = [2, 32], strides = [1, 1]} : vector<2x96xf32> to vector<2x32xf32>
    %249 = vector.extract_strided_slice %239 {offsets = [0, 96], sizes = [2, 32], strides = [1, 1]} : vector<2x128xf32> to vector<2x32xf32>
    %250 = math.tanh %249 : vector<2x32xf32>
    %251 = arith.mulf %247, %232 : vector<2x32xf32>
    %252 = arith.mulf %246, %250 : vector<2x32xf32>
    %253 = arith.addf %251, %252 : vector<2x32xf32>
    %254 = math.tanh %253 : vector<2x32xf32>
    %255 = arith.mulf %248, %254 : vector<2x32xf32>
    %c0_47 = arith.constant 0 : index
    %c2 = arith.constant 2 : index
    %c0_48 = arith.constant 0 : index
    %256 = vector.load %arg11[%c0_47, %c2, %c0_48] : memref<2x8x32xf32, #tpu.memory_space<vmem>>, vector<2x1x32xf32>
    %257 = vector.shape_cast %256 : vector<2x1x32xf32> to vector<2x32xf32>
    %258 = vector.shape_cast %255 : vector<2x32xf32> to vector<2x1x32xf32>
    tpu.vector_store %arg11[%c0_47, %c2, %c0_48], %258 {strides = array<i32>} : memref<2x8x32xf32, #tpu.memory_space<vmem>>, vector<2x1x32xf32>,
    %cst_49 = arith.constant dense<0.000000e+00> : vector<2x128xf32>
    %259 = tpu.matmul %255, %195, %cst_49 {dimension_numbers = #tpu.dot_dimension_numbers<[1], [0], [0], [1], [0, 0, 1, 1], [], []>} : vector<2x32xf32>, vector<32x128xf32>, vector<2x128xf32> -> vector<2x128xf32>
    %260 = arith.addf %259, %41 : vector<2x128xf32>
    %261 = vector.extract_strided_slice %260 {offsets = [0, 0], sizes = [2, 96], strides = [1, 1]} : vector<2x128xf32> to vector<2x96xf32>
    %262 = arith.negf %261 : vector<2x96xf32>
    %263 = math.exp %262 : vector<2x96xf32>
    %cst_50 = arith.constant 1.000000e+00 : f32
    %264 = vector.broadcast %cst_50 : f32 to vector<2x96xf32>
    %265 = arith.addf %264, %263 : vector<2x96xf32>
    %266 = arith.divf %264, %265 : vector<2x96xf32>
    %267 = vector.extract_strided_slice %266 {offsets = [0, 0], sizes = [2, 32], strides = [1, 1]} : vector<2x96xf32> to vector<2x32xf32>
    %268 = vector.extract_strided_slice %266 {offsets = [0, 32], sizes = [2, 32], strides = [1, 1]} : vector<2x96xf32> to vector<2x32xf32>
    %269 = vector.extract_strided_slice %266 {offsets = [0, 64], sizes = [2, 32], strides = [1, 1]} : vector<2x96xf32> to vector<2x32xf32>
    %270 = vector.extract_strided_slice %260 {offsets = [0, 96], sizes = [2, 32], strides = [1, 1]} : vector<2x128xf32> to vector<2x32xf32>
    %271 = math.tanh %270 : vector<2x32xf32>
    %272 = arith.mulf %268, %253 : vector<2x32xf32>
    %273 = arith.mulf %267, %271 : vector<2x32xf32>
    %274 = arith.addf %272, %273 : vector<2x32xf32>
    %275 = math.tanh %274 : vector<2x32xf32>
    %276 = arith.mulf %269, %275 : vector<2x32xf32>
    %c0_51 = arith.constant 0 : index
    %c3 = arith.constant 3 : index
    %c0_52 = arith.constant 0 : index
    %277 = vector.load %arg11[%c0_51, %c3, %c0_52] : memref<2x8x32xf32, #tpu.memory_space<vmem>>, vector<2x1x32xf32>
    %278 = vector.shape_cast %277 : vector<2x1x32xf32> to vector<2x32xf32>
    %279 = vector.shape_cast %276 : vector<2x32xf32> to vector<2x1x32xf32>
    tpu.vector_store %arg11[%c0_51, %c3, %c0_52], %279 {strides = array<i32>} : memref<2x8x32xf32, #tpu.memory_space<vmem>>, vector<2x1x32xf32>,
    %cst_53 = arith.constant dense<0.000000e+00> : vector<2x128xf32>
    %280 = tpu.matmul %276, %195, %cst_53 {dimension_numbers = #tpu.dot_dimension_numbers<[1], [0], [0], [1], [0, 0, 1, 1], [], []>} : vector<2x32xf32>, vector<32x128xf32>, vector<2x128xf32> -> vector<2x128xf32>
    %281 = arith.addf %280, %43 : vector<2x128xf32>
    %282 = vector.extract_strided_slice %281 {offsets = [0, 0], sizes = [2, 96], strides = [1, 1]} : vector<2x128xf32> to vector<2x96xf32>
    %283 = arith.negf %282 : vector<2x96xf32>
    %284 = math.exp %283 : vector<2x96xf32>
    %cst_54 = arith.constant 1.000000e+00 : f32
    %285 = vector.broadcast %cst_54 : f32 to vector<2x96xf32>
    %286 = arith.addf %285, %284 : vector<2x96xf32>
    %287 = arith.divf %285, %286 : vector<2x96xf32>
    %288 = vector.extract_strided_slice %287 {offsets = [0, 0], sizes = [2, 32], strides = [1, 1]} : vector<2x96xf32> to vector<2x32xf32>
    %289 = vector.extract_strided_slice %287 {offsets = [0, 32], sizes = [2, 32], strides = [1, 1]} : vector<2x96xf32> to vector<2x32xf32>
    %290 = vector.extract_strided_slice %287 {offsets = [0, 64], sizes = [2, 32], strides = [1, 1]} : vector<2x96xf32> to vector<2x32xf32>
    %291 = vector.extract_strided_slice %281 {offsets = [0, 96], sizes = [2, 32], strides = [1, 1]} : vector<2x128xf32> to vector<2x32xf32>
    %292 = math.tanh %291 : vector<2x32xf32>
    %293 = arith.mulf %289, %274 : vector<2x32xf32>
    %294 = arith.mulf %288, %292 : vector<2x32xf32>
    %295 = arith.addf %293, %294 : vector<2x32xf32>
    %296 = math.tanh %295 : vector<2x32xf32>
    %297 = arith.mulf %290, %296 : vector<2x32xf32>
    %c0_55 = arith.constant 0 : index
    %c4 = arith.constant 4 : index
    %c0_56 = arith.constant 0 : index
    %298 = vector.load %arg11[%c0_55, %c4, %c0_56] : memref<2x8x32xf32, #tpu.memory_space<vmem>>, vector<2x1x32xf32>
    %299 = vector.shape_cast %298 : vector<2x1x32xf32> to vector<2x32xf32>
    %300 = vector.shape_cast %297 : vector<2x32xf32> to vector<2x1x32xf32>
    tpu.vector_store %arg11[%c0_55, %c4, %c0_56], %300 {strides = array<i32>} : memref<2x8x32xf32, #tpu.memory_space<vmem>>, vector<2x1x32xf32>,
    %cst_57 = arith.constant dense<0.000000e+00> : vector<2x128xf32>
    %301 = tpu.matmul %297, %195, %cst_57 {dimension_numbers = #tpu.dot_dimension_numbers<[1], [0], [0], [1], [0, 0, 1, 1], [], []>} : vector<2x32xf32>, vector<32x128xf32>, vector<2x128xf32> -> vector<2x128xf32>
    %302 = arith.addf %301, %45 : vector<2x128xf32>
    %303 = vector.extract_strided_slice %302 {offsets = [0, 0], sizes = [2, 96], strides = [1, 1]} : vector<2x128xf32> to vector<2x96xf32>
    %304 = arith.negf %303 : vector<2x96xf32>
    %305 = math.exp %304 : vector<2x96xf32>
    %cst_58 = arith.constant 1.000000e+00 : f32
    %306 = vector.broadcast %cst_58 : f32 to vector<2x96xf32>
    %307 = arith.addf %306, %305 : vector<2x96xf32>
    %308 = arith.divf %306, %307 : vector<2x96xf32>
    %309 = vector.extract_strided_slice %308 {offsets = [0, 0], sizes = [2, 32], strides = [1, 1]} : vector<2x96xf32> to vector<2x32xf32>
    %310 = vector.extract_strided_slice %308 {offsets = [0, 32], sizes = [2, 32], strides = [1, 1]} : vector<2x96xf32> to vector<2x32xf32>
    %311 = vector.extract_strided_slice %308 {offsets = [0, 64], sizes = [2, 32], strides = [1, 1]} : vector<2x96xf32> to vector<2x32xf32>
    %312 = vector.extract_strided_slice %302 {offsets = [0, 96], sizes = [2, 32], strides = [1, 1]} : vector<2x128xf32> to vector<2x32xf32>
    %313 = math.tanh %312 : vector<2x32xf32>
    %314 = arith.mulf %310, %295 : vector<2x32xf32>
    %315 = arith.mulf %309, %313 : vector<2x32xf32>
    %316 = arith.addf %314, %315 : vector<2x32xf32>
    %317 = math.tanh %316 : vector<2x32xf32>
    %318 = arith.mulf %311, %317 : vector<2x32xf32>
    %c0_59 = arith.constant 0 : index
    %c5 = arith.constant 5 : index
    %c0_60 = arith.constant 0 : index
    %319 = vector.load %arg11[%c0_59, %c5, %c0_60] : memref<2x8x32xf32, #tpu.memory_space<vmem>>, vector<2x1x32xf32>
    %320 = vector.shape_cast %319 : vector<2x1x32xf32> to vector<2x32xf32>
    %321 = vector.shape_cast %318 : vector<2x32xf32> to vector<2x1x32xf32>
    tpu.vector_store %arg11[%c0_59, %c5, %c0_60], %321 {strides = array<i32>} : memref<2x8x32xf32, #tpu.memory_space<vmem>>, vector<2x1x32xf32>,
    %cst_61 = arith.constant dense<0.000000e+00> : vector<2x128xf32>
    %322 = tpu.matmul %318, %195, %cst_61 {dimension_numbers = #tpu.dot_dimension_numbers<[1], [0], [0], [1], [0, 0, 1, 1], [], []>} : vector<2x32xf32>, vector<32x128xf32>, vector<2x128xf32> -> vector<2x128xf32>
    %323 = arith.addf %322, %47 : vector<2x128xf32>
    %324 = vector.extract_strided_slice %323 {offsets = [0, 0], sizes = [2, 96], strides = [1, 1]} : vector<2x128xf32> to vector<2x96xf32>
    %325 = arith.negf %324 : vector<2x96xf32>
    %326 = math.exp %325 : vector<2x96xf32>
    %cst_62 = arith.constant 1.000000e+00 : f32
    %327 = vector.broadcast %cst_62 : f32 to vector<2x96xf32>
    %328 = arith.addf %327, %326 : vector<2x96xf32>
    %329 = arith.divf %327, %328 : vector<2x96xf32>
    %330 = vector.extract_strided_slice %329 {offsets = [0, 0], sizes = [2, 32], strides = [1, 1]} : vector<2x96xf32> to vector<2x32xf32>
    %331 = vector.extract_strided_slice %329 {offsets = [0, 32], sizes = [2, 32], strides = [1, 1]} : vector<2x96xf32> to vector<2x32xf32>
    %332 = vector.extract_strided_slice %329 {offsets = [0, 64], sizes = [2, 32], strides = [1, 1]} : vector<2x96xf32> to vector<2x32xf32>
    %333 = vector.extract_strided_slice %323 {offsets = [0, 96], sizes = [2, 32], strides = [1, 1]} : vector<2x128xf32> to vector<2x32xf32>
    %334 = math.tanh %333 : vector<2x32xf32>
    %335 = arith.mulf %331, %316 : vector<2x32xf32>
    %336 = arith.mulf %330, %334 : vector<2x32xf32>
    %337 = arith.addf %335, %336 : vector<2x32xf32>
    %338 = math.tanh %337 : vector<2x32xf32>
    %339 = arith.mulf %332, %338 : vector<2x32xf32>
    %c0_63 = arith.constant 0 : index
    %c6 = arith.constant 6 : index
    %c0_64 = arith.constant 0 : index
    %340 = vector.load %arg11[%c0_63, %c6, %c0_64] : memref<2x8x32xf32, #tpu.memory_space<vmem>>, vector<2x1x32xf32>
    %341 = vector.shape_cast %340 : vector<2x1x32xf32> to vector<2x32xf32>
    %342 = vector.shape_cast %339 : vector<2x32xf32> to vector<2x1x32xf32>
    tpu.vector_store %arg11[%c0_63, %c6, %c0_64], %342 {strides = array<i32>} : memref<2x8x32xf32, #tpu.memory_space<vmem>>, vector<2x1x32xf32>,
    %cst_65 = arith.constant dense<0.000000e+00> : vector<2x128xf32>
    %343 = tpu.matmul %339, %195, %cst_65 {dimension_numbers = #tpu.dot_dimension_numbers<[1], [0], [0], [1], [0, 0, 1, 1], [], []>} : vector<2x32xf32>, vector<32x128xf32>, vector<2x128xf32> -> vector<2x128xf32>
    %344 = arith.addf %343, %49 : vector<2x128xf32>
    %345 = vector.extract_strided_slice %344 {offsets = [0, 0], sizes = [2, 96], strides = [1, 1]} : vector<2x128xf32> to vector<2x96xf32>
    %346 = arith.negf %345 : vector<2x96xf32>
    %347 = math.exp %346 : vector<2x96xf32>
    %cst_66 = arith.constant 1.000000e+00 : f32
    %348 = vector.broadcast %cst_66 : f32 to vector<2x96xf32>
    %349 = arith.addf %348, %347 : vector<2x96xf32>
    %350 = arith.divf %348, %349 : vector<2x96xf32>
    %351 = vector.extract_strided_slice %350 {offsets = [0, 0], sizes = [2, 32], strides = [1, 1]} : vector<2x96xf32> to vector<2x32xf32>
    %352 = vector.extract_strided_slice %350 {offsets = [0, 32], sizes = [2, 32], strides = [1, 1]} : vector<2x96xf32> to vector<2x32xf32>
    %353 = vector.extract_strided_slice %350 {offsets = [0, 64], sizes = [2, 32], strides = [1, 1]} : vector<2x96xf32> to vector<2x32xf32>
    %354 = vector.extract_strided_slice %344 {offsets = [0, 96], sizes = [2, 32], strides = [1, 1]} : vector<2x128xf32> to vector<2x32xf32>
    %355 = math.tanh %354 : vector<2x32xf32>
    %356 = arith.mulf %352, %337 : vector<2x32xf32>
    %357 = arith.mulf %351, %355 : vector<2x32xf32>
    %358 = arith.addf %356, %357 : vector<2x32xf32>
    %359 = math.tanh %358 : vector<2x32xf32>
    %360 = arith.mulf %353, %359 : vector<2x32xf32>
    %c0_67 = arith.constant 0 : index
    %c7 = arith.constant 7 : index
    %c0_68 = arith.constant 0 : index
    %361 = vector.load %arg11[%c0_67, %c7, %c0_68] : memref<2x8x32xf32, #tpu.memory_space<vmem>>, vector<2x1x32xf32>
    %362 = vector.shape_cast %361 : vector<2x1x32xf32> to vector<2x32xf32>
    %363 = vector.shape_cast %360 : vector<2x32xf32> to vector<2x1x32xf32>
    tpu.vector_store %arg11[%c0_67, %c7, %c0_68], %363 {strides = array<i32>} : memref<2x8x32xf32, #tpu.memory_space<vmem>>, vector<2x1x32xf32>,
    %c0_69 = arith.constant 0 : index
    %c0_70 = arith.constant 0 : index
    %c0_71 = arith.constant 0 : index
    %364 = vector.load %arg11[%c0_69, %c0_70, %c0_71] : memref<2x8x32xf32, #tpu.memory_space<vmem>>, vector<2x8x32xf32>
    %365 = vector.shape_cast %364 : vector<2x8x32xf32> to vector<16x32xf32>
    %cst_72 = arith.constant dense<0.000000e+00> : vector<16x41xf32>
    %366 = tpu.matmul %365, %1, %cst_72 {dimension_numbers = #tpu.dot_dimension_numbers<[1], [0], [0], [1], [0, 0, 1, 1], [], []>} : vector<16x32xf32>, vector<32x41xf32>, vector<16x41xf32> -> vector<16x41xf32>
    %367 = vector.broadcast %0 : vector<1x41xf32> to vector<16x41xf32>
    %368 = arith.addf %366, %367 : vector<16x41xf32>
    %369 = vector.shape_cast %368 : vector<16x41xf32> to vector<2x8x41xf32>
    %c0_73 = arith.constant 0 : index
    %c0_74 = arith.constant 0 : index
    %c0_75 = arith.constant 0 : index
    %370 = vector.load %arg10[%c0_73, %c0_74, %c0_75] : memref<2x8x41xf32, #tpu.memory_space<vmem>>, vector<2x8x41xf32>
    tpu.vector_store %arg10[%c0_73, %c0_74, %c0_75], %369 {strides = array<i32>} : memref<2x8x41xf32, #tpu.memory_space<vmem>>, vector<2x8x41xf32>,
    return
  }
  func.func @transform_0(%arg0: i32) -> (i32, i32, i32) {
    %c0_i32 = arith.constant 0 : i32
    %c0_i32_0 = arith.constant 0 : i32
    %c0_i32_1 = arith.constant 0 : i32
    return %arg0, %c0_i32, %c0_i32_0 : i32, i32, i32
  }
  func.func @transform_1(%arg0: i32) -> (i32, i32) {
    %c0_i32 = arith.constant 0 : i32
    %c0_i32_0 = arith.constant 0 : i32
    %c0_i32_1 = arith.constant 0 : i32
    return %c0_i32, %c0_i32_0 : i32, i32
  }
  func.func @transform_2(%arg0: i32) -> (i32, i32) {
    %c0_i32 = arith.constant 0 : i32
    %c0_i32_0 = arith.constant 0 : i32
    %c0_i32_1 = arith.constant 0 : i32
    return %c0_i32, %c0_i32_0 : i32, i32
  }
  func.func @transform_3(%arg0: i32) -> (i32, i32) {
    %c0_i32 = arith.constant 0 : i32
    %c0_i32_0 = arith.constant 0 : i32
    %c0_i32_1 = arith.constant 0 : i32
    return %c0_i32, %c0_i32_0 : i32, i32
  }
  func.func @transform_4(%arg0: i32) -> (i32, i32) {
    %c0_i32 = arith.constant 0 : i32
    %c0_i32_0 = arith.constant 0 : i32
    %c0_i32_1 = arith.constant 0 : i32
    return %c0_i32, %c0_i32_0 : i32, i32
  }
  func.func @transform_5(%arg0: i32) -> (i32, i32) {
    %c0_i32 = arith.constant 0 : i32
    %c0_i32_0 = arith.constant 0 : i32
    %c0_i32_1 = arith.constant 0 : i32
    return %c0_i32, %c0_i32_0 : i32, i32
  }
  func.func @transform_6(%arg0: i32) -> (i32, i32) {
    %c0_i32 = arith.constant 0 : i32
    %c0_i32_0 = arith.constant 0 : i32
    %c0_i32_1 = arith.constant 0 : i32
    return %c0_i32, %c0_i32_0 : i32, i32
  }
  func.func @transform_7(%arg0: i32) -> (i32, i32) {
    %c0_i32 = arith.constant 0 : i32
    %c0_i32_0 = arith.constant 0 : i32
    %c0_i32_1 = arith.constant 0 : i32
    return %c0_i32, %c0_i32_0 : i32, i32
  }
  func.func @transform_8(%arg0: i32) -> (i32, i32) {
    %c0_i32 = arith.constant 0 : i32
    %c0_i32_0 = arith.constant 0 : i32
    %c0_i32_1 = arith.constant 0 : i32
    return %c0_i32, %c0_i32_0 : i32, i32
  }
  func.func @transform_9(%arg0: i32) -> (i32, i32, i32) {
    %c0_i32 = arith.constant 0 : i32
    %c0_i32_0 = arith.constant 0 : i32
    %c0_i32_1 = arith.constant 0 : i32
    return %arg0, %c0_i32, %c0_i32_0 : i32, i32, i32
  }
}

</mosaic_0001>

<bundles_post_ra>
// kernel: tpu_custom_call.1
= control target key start
LH: loop header
LB: loop body
LE: loop exit
PB: predicated region body
PF: predicated region fallthrough
CT: control target
= control target key end

     0   :  { %14 = vsyncpa [#allocation4], 0  ;;  %s3615_s0 = inlined_call_operand.hbm [shape: f32[2,8,41], index: 0, kind: input, shape index: {}]   ;;  %s3616_s1 = inlined_call_operand.hbm [shape: f32[41,128], index: 1, kind: input, shape index: {}]   ;;  %s3617_s2 = inlined_call_operand.hbm [shape: f32[32,128], index: 2, kind: input, shape index: {}]   ;;  %s3618_s3 = inlined_call_operand.vmem [shape: f32[1,128], index: 3, kind: input, shape index: {}]   ;;  %s3619_s4 = inlined_call_operand.hbm [shape: f32[41,128], index: 4, kind: input, shape index: {}]   ;;  %s3620_s5 = inlined_call_operand.hbm [shape: f32[32,128], index: 5, kind: input, shape index: {}]   ;;  %s3621_s6 = inlined_call_operand.vmem [shape: f32[1,128], index: 6, kind: input, shape index: {}]   ;;  %s3622_s7 = inlined_call_operand.hbm [shape: f32[32,41], index: 7, kind: input, shape index: {}]   ;;  %s3623_s8 = inlined_call_operand.vmem [shape: f32[1,41], index: 8, kind: input, shape index: {}]   ;;  %s3624_s9 = inlined_call_operand.hbm [shape: f32[2,8,41], index: 9, kind: output, shape index: {}]  }
   0x1   :  { %15 = vsyncpa [#allocation7], 0 }
   0x2   :  { %16 = vsyncpa [#allocation10], 0 }
   0x3   :  { %17 = vsyncpa [#allocation13], 0 }
   0x4   :  { %18 = vsyncpa [#allocation5], 0  ;;  %s3038_s30 = smov [#allocation6]   ;;  %s3039_s11 = smov [#allocation9]  }
   0x5   :  { %s36_s10 = sshll.u32 %s3038_s30, 4  ;;  %s62_s12 = sshll.u32 %s3039_s11, 4  ;;  %s37_s10 = int_to_ptr.vmem [resolvable:$true] %s36_s10  ;;  %s63_s12 = int_to_ptr.vmem [resolvable:$true] %s62_s12 }
   0x6   :  { %s2896_s13 = scalar_lea.vmem %s37_s10, 768  ;;  %p2901_p1 = scmp.lt.s32.totalorder %s37_s10, %s37_s10 }
   0x7   :  { %p2897_p0 = scmp.ne.s32.totalorder %s37_s10, %s2896_s13  ;;  %p2902_p2 = scmp.lt.s32.totalorder %s2896_s13, %s2896_s13 }
   0x9   :  { %p2903_p3 = por %p2902_p2, %p2901_p1 }
   0xb   :  { %p2904_p4 = pnand %p2903_p3, %p2897_p0 }
   0xd   :  { %2907 = shalt.err (!%p2904_p4)
}
   0xe   :  { %s3040_s14 = smov 128   ;;  %s3041_s15 = smov 8  }
   0xf   :  { %42 = dma.hbm_to_vmem [thread:$0]  %s3616_s1, 768, %s37_s10, [#allocation7], %s3040_s14, %s3040_s14, %s3041_s15  }
  0x10   :  { %s2916_s18 = scalar_lea.vmem %s63_s12, 768  ;;  %p2921_p6 = scmp.lt.s32.totalorder %s63_s12, %s63_s12 }
  0x11   :  { %p2917_p5 = scmp.ne.s32.totalorder %s63_s12, %s2916_s18  ;;  %p2922_p7 = scmp.lt.s32.totalorder %s2916_s18, %s2916_s18 }
  0x13   :  { %p2923_p8 = por %p2922_p7, %p2921_p6 }
  0x15   :  { %p2924_p9 = pnand %p2923_p8, %p2917_p5 }
  0x17   :  { %2927 = shalt.err (!%p2924_p9)
}
  0x18   :  { %68 = dma.hbm_to_vmem [thread:$0]  %s3619_s4, 768, %s63_s12, [#allocation10], %s3040_s14, %s3040_s14, %s3041_s15  }
  0x19   :  { %s3042_s21 = smov [#allocation3]   ;;  %s3043_s23 = smov [#allocation8]  }
  0x1a   :  { %s24_s22 = sshll.u32 %s3042_s21, 4  ;;  %s48_s24 = sshll.u32 %s3043_s23, 4  ;;  %s25_s22 = int_to_ptr.vmem [resolvable:$true] %s24_s22  ;;  %s49_s24 = int_to_ptr.vmem [resolvable:$true] %s48_s24 }
  0x1b   :  { %s2936_s1 = scalar_lea.vmem %s25_s22, 256  ;;  %p2941_p11 = scmp.lt.s32.totalorder %s25_s22, %s25_s22 }
  0x1c   :  { %p2937_p10 = scmp.ne.s32.totalorder %s25_s22, %s2936_s1  ;;  %p2942_p12 = scmp.lt.s32.totalorder %s2936_s1, %s2936_s1 }
  0x1e   :  { %p2943_p13 = por %p2942_p12, %p2941_p11 }
  0x20   :  { %p2944_p0 = pnand %p2943_p13, %p2937_p10 }
  0x22   :  { %2947 = shalt.err (!%p2944_p0)
}
  0x23   :  { %30 = dma.hbm_to_vmem [thread:$0]  %s3615_s0, 256, %s25_s22, [#allocation4], %s3040_s14, %s3040_s14, %s3041_s15  }
  0x24   :  { %s2956_s4 = scalar_lea.vmem %s49_s24, 512  ;;  %p2961_p2 = scmp.lt.s32.totalorder %s49_s24, %s49_s24 }
  0x25   :  { %p2957_p1 = scmp.ne.s32.totalorder %s49_s24, %s2956_s4  ;;  %p2962_p3 = scmp.lt.s32.totalorder %s2956_s4, %s2956_s4 }
  0x27   :  { %p2963_p4 = por %p2962_p3, %p2961_p2 }
  0x29   :  { %p2964_p5 = pnand %p2963_p4, %p2957_p1 }
  0x2b   :  { %2967 = shalt.err (!%p2964_p5)
}
  0x2c   :  { %54 = dma.hbm_to_vmem [thread:$0]  %s3617_s2, 512, %s49_s24, [#allocation7], %s3040_s14, %s3040_s14, %s3041_s15  }
  0x2d   :  { %s3044_s29 = smov [#allocation11]   ;;  %s3045_s10 = smov [#allocation12]  }
  0x2e   :  { %s74_s30 = sshll.u32 %s3044_s29, 4  ;;  %s88_s11 = sshll.u32 %s3045_s10, 4  ;;  %s75_s30 = int_to_ptr.vmem [resolvable:$true] %s74_s30  ;;  %s89_s11 = int_to_ptr.vmem [resolvable:$true] %s88_s11 }
  0x2f   :  { %s2976_s0 = scalar_lea.vmem %s75_s30, 512  ;;  %p2981_p7 = scmp.lt.s32.totalorder %s75_s30, %s75_s30 }
  0x30   :  { %p2977_p6 = scmp.ne.s32.totalorder %s75_s30, %s2976_s0  ;;  %p2982_p8 = scmp.lt.s32.totalorder %s2976_s0, %s2976_s0 }
  0x32   :  { %p2983_p9 = por %p2982_p8, %p2981_p7 }
  0x34   :  { %p2984_p10 = pnand %p2983_p9, %p2977_p6 }
  0x36   :  { %2987 = shalt.err (!%p2984_p10)
}
  0x37   :  { %80 = dma.hbm_to_vmem [thread:$0]  %s3620_s5, 512, %s75_s30, [#allocation10], %s3040_s14, %s3040_s14, %s3041_s15  }
  0x38   :  { %s2996_s2 = scalar_lea.vmem %s89_s11, 512  ;;  %p3001_p12 = scmp.lt.s32.totalorder %s89_s11, %s89_s11 }
  0x39   :  { %p2997_p11 = scmp.ne.s32.totalorder %s89_s11, %s2996_s2  ;;  %p3002_p13 = scmp.lt.s32.totalorder %s2996_s2, %s2996_s2 }
  0x3b   :  { %p3003_p0 = por %p3002_p13, %p3001_p12 }
  0x3d   :  { %p3004_p1 = pnand %p3003_p0, %p2997_p11 }
  0x3f   :  { %3007 = shalt.err (!%p3004_p1)
}
  0x40   :  { %94 = dma.hbm_to_vmem [thread:$0]  %s3622_s7, 512, %s89_s11, [#allocation13], %s3040_s14, %s3040_s14, %s3041_s15  }
  0x41   :  { %3028 = dma.done.wait [#allocation4], 256  }
  0x42   :  { %3029 = vsyncadd [#allocation4], 4294967040 }
  0x43   :  { %3030 = dma.done.wait [#allocation7], 1280  }
  0x44   :  { %3031 = vsyncadd [#allocation7], 4294966016 }
  0x45   :  { %3032 = dma.done.wait [#allocation10], 1280  }
  0x46   :  { %3033 = vsyncadd [#allocation10], 4294966016 }
  0x47   :  { %3034 = dma.done.wait [#allocation13], 512  }
  0x48   :  { %3035 = vsyncadd [#allocation13], 4294966784  ;;  %vm142_vm0 = vcmask 1040384   ;;  %v127_v0 = vld [vmem:[#allocation6 + $0x28] sm:$0x1]  ;;  %v126_v1 = vld [vmem:[#allocation6 + $0x20] sm:$0xff] }
  0x49   :  { %vm135_vm1 = vcmask 334848   ;;  %2529 = vmatprep.subr.msk.mxu0 %vm142_vm0, %v127_v0  ;;  %v125_v2 = vld [vmem:[#allocation6 + $0x18] sm:$0xff]  ;;  %v120_v3 = vld [vmem:[#allocation3] sm:$0xff]  ;;  %v123_v5 = vld [vmem:[#allocation6 + $0x8] sm:$0xff]  ;;  %v3046_v9 = vmov 0.0   ;;  %vm3047_vm2 = vmmov 0  }
  0x4a   :  { %2530 = vmatpush3.msk.msra.mxu0 %vm142_vm0, %v127_v0  ;;  %2541 = vmatprep.mubr.msk.f32.mxu0 %vm135_vm1, %v120_v3  ;;  %v124_v4 = vld [vmem:[#allocation6 + $0x10] sm:$0xff]  ;;  %v122_v6 = vld [vmem:[#allocation6] sm:$0xff]  ;;  %v3142_v7 = vld [vmem:[#allocation3 + $0x8] sm:$0xff]  ;;  %vm319_vm3 = vcmask 1041409   ;;  %s3049_s18 = smov 64   ;;  %vm322_vm4 = vcmask 261120  }
  0x4b   :  { %2531 = vmatprep.subr.mxu0 %v126_v1  ;;  %2556 = vmatprep.mubr.msk.f32.mxu1 %vm135_vm1, %v120_v3  ;;  %v3144_v8 = vld [vmem:[#allocation8 + $0x18] sm:$0xff]  ;;  %v3149_v10 = vld [vmem:[#allocation8 + $0x10] sm:$0xff]  ;;  %v3155_v11 = vld [vmem:[#allocation8 + $0x8] sm:$0xff]  ;;  %vm1285_vm5 = vcmask 253952   ;;  %s3051_s22 = smov [#allocation14]  }
  0x4c   :  { %2532 = vmatpush3.msra.mxu0 %v126_v1  ;;  %v3159_v12 = vld [vmem:[#allocation8] sm:$0xff]  ;;  %v2385_v13 = vld [vmem:[%s3618_s3] ss:$0 sm:$0xff]  ;;  %s3048_s3 = smov 32   ;;  %v226_v53 = vld [vmem:[#allocation9 + $0x28] sm:$0x1] }
  0x4d   :  { %2533 = vmatprep.subr.mxu0 %v125_v2  ;;  %v225_v54 = vld [vmem:[#allocation9 + $0x20] sm:$0xff]  ;;  %2544 = vmatprep.subr.msk.mxu1 %vm142_vm0, %v226_v53  ;;  %v224_v55 = vld [vmem:[#allocation9 + $0x18] sm:$0xff]  ;;  %v223_v56 = vld [vmem:[#allocation9 + $0x10] sm:$0xff]  ;;  %s2370_s23 = sshll.u32 %s3051_s22, 4  ;;  %s2371_s23 = int_to_ptr.vmem [resolvable:$true] %s2370_s23 }
  0x4e   :  { %2534 = vmatpush3.msra.mxu0 %v125_v2  ;;  %2545 = vmatpush3.msk.msra.mxu1 %vm142_vm0, %v226_v53  ;;  %v222_v57 = vld [vmem:[#allocation9 + $0x8] sm:$0xff]  ;;  %v221_v58 = vld [vmem:[#allocation9] sm:$0xff]  ;;  %v2389_v0 = vld [vmem:[%s3621_s6] ss:$0 sm:$0xff]  ;;  %s3008_s24 = scalar_lea.vmem %s2371_s23, 256  ;;  %p3013_p3 = scmp.lt.s32.totalorder %s2371_s23, %s2371_s23 }
  0x4f   :  { %2535 = vmatprep.subr.mxu0 %v124_v4  ;;  %2546 = vmatprep.subr.mxu1 %v225_v54  ;;  %p3009_p2 = scmp.ne.s32.totalorder %s2371_s23, %s3008_s24  ;;  %p3014_p4 = scmp.lt.s32.totalorder %s3008_s24, %s3008_s24 }
  0x50   :  { %2536 = vmatpush3.msra.mxu0 %v124_v4  ;;  %2547 = vmatpush3.msra.mxu1 %v225_v54 }
  0x51   :  { %2537 = vmatprep.subr.mxu0 %v123_v5  ;;  %2548 = vmatprep.subr.mxu1 %v224_v55  ;;  %p3015_p5 = por %p3014_p4, %p3013_p3 }
  0x52   :  { %2538 = vmatpush3.msra.mxu0 %v123_v5  ;;  %2549 = vmatpush3.msra.mxu1 %v224_v55 }
  0x53   :  { %2539 = vmatprep.subr.mxu0 %v122_v6  ;;  %2550 = vmatprep.subr.mxu1 %v223_v56  ;;  %p3016_p6 = pnand %p3015_p5, %p3009_p2 }
  0x54   :  { %2540 = vmatpush3.msra.mxu0 %v122_v6  ;;  %2551 = vmatpush3.msra.mxu1 %v223_v56 }
  0x55   :  { %2542 = vmatmul.mubr.msk.f32.vlgmr.msra.gmra.mxu0 %vm135_vm1, %v3142_v7  ;;  %2559 = vmatprep.subr.mxu0 %v3046_v9 }
  0x56   :  { %2560 = vmatpush3.msra.mxu0 %v3144_v8  ;;  %2567 = vmatprep.mubr.msk.f32.mxu0 %vm3047_vm2, %v3046_v9 }
  0x57   :  { %2561 = vmatprep.subr.mxu0 %v3046_v9  ;;  %2552 = vmatprep.subr.mxu1 %v222_v57 }
  0x58   :  { %2562 = vmatpush3.msra.mxu0 %v3149_v10  ;;  %2553 = vmatpush3.msra.mxu1 %v222_v57 }
  0x59   :  { %2563 = vmatprep.subr.mxu0 %v3046_v9  ;;  %2554 = vmatprep.subr.mxu1 %v221_v58 }
  0x5a   :  { %2564 = vmatpush3.msra.mxu0 %v3155_v11  ;;  %2555 = vmatpush3.msra.mxu1 %v221_v58 }
  0x5b   :  { %2565 = vmatprep.subr.mxu0 %v3046_v9  ;;  %2557 = vmatmul.mubr.msk.f32.vlgmr.msra.gmra.mxu1 %vm135_vm1, %v3142_v7 }
  0x5c   :  { %2566 = vmatpush3.msra.mxu0 %v3159_v12  ;;  %2570 = vmatprep.subr.mxu1 %v3046_v9 }
  0x5d   :  { %2568 = vmatmul.mubr.f32.vlgmr.msra.gmra.mxu0 %v3046_v9  ;;  %2581 = vmatprep.subr.mxu0 %v3046_v9 }
  0x5e   :  { %2582 = vmatpush3.msra.mxu0 %v3144_v8  ;;  %2589 = vmatprep.mubr.msk.f32.mxu0 %vm3047_vm2, %v3046_v9 }
  0x5f   :  { %2583 = vmatprep.subr.mxu0 %v3046_v9  ;;  %2571 = vmatpush3.msra.mxu1 %v3144_v8 }
  0x60   :  { %2584 = vmatpush3.msra.mxu0 %v3149_v10  ;;  %2578 = vmatprep.mubr.msk.f32.mxu1 %vm3047_vm2, %v3046_v9 }
  0x61   :  { %2585 = vmatprep.subr.mxu0 %v3046_v9  ;;  %2572 = vmatprep.subr.mxu1 %v3046_v9 }
  0x62   :  { %2586 = vmatpush3.msra.mxu0 %v3155_v11  ;;  %2573 = vmatpush3.msra.mxu1 %v3149_v10 }
  0x63   :  { %2587 = vmatprep.subr.mxu0 %v3046_v9  ;;  %2574 = vmatprep.subr.mxu1 %v3046_v9 }
  0x64   :  { %2588 = vmatpush3.msra.mxu0 %v3159_v12  ;;  %2575 = vmatpush3.msra.mxu1 %v3155_v11 }
  0x65   :  { %2603 = vmatprep.subr.mxu0 %v3046_v9  ;;  %2576 = vmatprep.subr.mxu1 %v3046_v9 }
  0x66   :  { %2577 = vmatpush3.msra.mxu1 %v3159_v12 }
  0x67   :  { %2592 = vmatprep.subr.mxu1 %v3046_v9 }
 0x115   :  { %v2543_v14 = vpop.f32.mrf.mxu0 }
 0x116   :  { %v218_v15 = vadd.f32 %v2543_v14, %v2385_v13 }
 0x117   :  { %v212_v16 = vpop.f32.mrf.mxu0 }
 0x118   :  { %v213_v17 = vadd.f32 %v2385_v13, %v212_v16  ;;  %v318_v18 = vrot.slane %v218_v15, 7  ;;  %v526_v19 = vrot.slane %v218_v15, 1  ;;  %v629_v20 = vrot.slane %v218_v15, 2 }
 0x119   :  { %v732_v21 = vrot.slane %v218_v15, 3  ;;  %v835_v22 = vrot.slane %v218_v15, 4  ;;  %v938_v23 = vrot.slane %v218_v15, 5  ;;  %v1041_v24 = vrot.slane %v218_v15, 6 }
 0x11a   :  { %v423_v25 = vrot.slane %v213_v17, 1  ;;  %v525_v26 = vrot.slane %v213_v17, 2  ;;  %v628_v27 = vrot.slane %v213_v17, 3  ;;  %v731_v28 = vrot.slane %v213_v17, 4 }
 0x11b   :  { %v834_v29 = vrot.slane %v213_v17, 5  ;;  %v937_v30 = vrot.slane %v213_v17, 6  ;;  %v1040_v31 = vrot.slane %v213_v17, 7  ;;  %v320_v32 = vsel %vm319_vm3, %v318_v18, %v213_v17  ;;  %v2558_v63 = vpop.f32.mrf.mxu1 }
 0x11c   :  { %v3181_v33 = vsel %vm319_vm3, %v218_v15, %v423_v25  ;;  %v3184_v34 = vsel %vm319_vm3, %v526_v19, %v525_v26  ;;  %v3187_v35 = vsel %vm319_vm3, %v629_v20, %v628_v27  ;;  %v3190_v37 = vsel %vm319_vm3, %v732_v21, %v731_v28 }
 0x11d   :  { %v392_v36 = vpop.f32.mrf.mxu0  ;;  %v3193_v38 = vsel %vm319_vm3, %v835_v22, %v834_v29  ;;  %v3196_v39 = vsel %vm319_vm3, %v938_v23, %v937_v30  ;;  %v3199_v40 = vsel %vm319_vm3, %v1041_v24, %v1040_v31  ;;  %v303_v1 = vpop.f32.mrf.mxu1  ;;  %v3239_v3 = vadd.f32 %v2558_v63, %v2389_v0 }
 0x11e   :  { %v393_v41 = vadd.f32 %v392_v36, %v320_v32  ;;  %v3237_v2 = vadd.f32 %v2389_v0, %v303_v1 }
 0x11f   :  { %v2569_v42 = vpop.f32.mrf.mxu0  ;;  %v1431_v7 = vrot.slane %v3239_v3, 1  ;;  %v1572_v14 = vrot.slane %v3239_v3, 2  ;;  %v1713_v16 = vrot.slane %v3239_v3, 3  ;;  %v1854_v19 = vrot.slane %v3239_v3, 4 }
 0x120   :  { %2760 = vtanh.f32 %v393_v41  ;;  %v2393_v44 = vmul.f32 -1.442695, %v393_v41  ;;  %v1290_v4 = vrot.slane %v3237_v2, 1  ;;  %v1430_v6 = vrot.slane %v3237_v2, 2 }
 0x121   :  { %v1571_v13 = vrot.slane %v3237_v2, 3  ;;  %v1712_v15 = vrot.slane %v3237_v2, 4  ;;  %v1853_v18 = vrot.slane %v3237_v2, 5  ;;  %v1994_v20 = vrot.slane %v3237_v2, 6 }
 0x122   :  { %2762 = vpow2.f32 %v2393_v44  ;;  %v3244_v5 = vsel %vm319_vm3, %v3239_v3, %v1290_v4  ;;  %v3253_v17 = vsel %vm319_vm3, %v1431_v7, %v1430_v6  ;;  %v1995_v23 = vrot.slane %v3239_v3, 5 }
 0x123   :  { %v3259_v21 = vsel %vm319_vm3, %v1572_v14, %v1571_v13  ;;  %v3262_v22 = vsel %vm319_vm3, %v1713_v16, %v1712_v15  ;;  %v2135_v24 = vrot.slane %v3237_v2, 7  ;;  %v3267_v25 = vsel %vm319_vm3, %v1854_v19, %v1853_v18 }
 0x124   :  { %v2136_v26 = vrot.slane %v3239_v3, 6  ;;  %v3271_v27 = vsel %vm319_vm3, %v1995_v23, %v1994_v20 }
 0x126   :  { %v3274_v28 = vsel %vm319_vm3, %v2136_v26, %v2135_v24 }
 0x12d   :  { %v2761_v43 = vpop.eup %2760 }
 0x12e   :  { %405 = vrot.lane.b32.xlu0 %v2761_v43, %s3048_s3 }
 0x12f   :  { %v2763_v45 = vpop.eup %2762 }
 0x130   :  { %v399_v46 = vadd.f32 1.0, %v2763_v45 }
 0x132   :  { %2764 = vrcp.f32 %v399_v46 }
 0x13f   :  { %v2765_v47 = vpop.eup %2764 }
 0x140   :  { %v403_v50 = vmul.f32 0.0, %v2765_v47 }
 0x1a0   :  { %v406_v48 = vpop.permute.xlu0 %405 }
 0x1a1   :  { %v408_v49 = vmul.f32 %v2765_v47, %v406_v48 }
 0x1a3   :  { %410 = vrot.lane.b32.xlu0 %v408_v49, %s3048_s3 }
 0x215   :  { %v411_v51 = vpop.permute.xlu0 %410 }
 0x216   :  { %v3203_v52 = vadd.f32 %v411_v51, %v403_v50 }
 0x218   :  { %2766 = vtanh.f32 %v3203_v52 }
 0x225   :  { %v2767_v59 = vpop.eup %2766 }
 0x226   :  { %416 = vrot.lane.b32.xlu1 %v2767_v59, %s3048_s3 }
 0x298   :  { %v417_v60 = vpop.permute.xlu1 %416 }
 0x299   :  { %v419_v61 = vmul.f32 %v2765_v47, %v417_v60 }
 0x29b   :  { %421 = vrot.lane.b32.xlu1 %v419_v61, %s3049_s18 }
 0x30d   :  { %v422_v62 = vpop.permute.xlu1 %421 }
 0x30e   :  { %2579 = vmatmul.mubr.msk.f32.vlgmr.msra.gmra.mxu1 %vm322_vm4, %v422_v62 }
 0x30f   :  { %2593 = vmatpush3.msra.mxu1 %v3144_v8  ;;  %2600 = vmatprep.mubr.msk.f32.mxu1 %vm3047_vm2, %v3046_v9 }
 0x310   :  { %2594 = vmatprep.subr.mxu1 %v3046_v9 }
 0x311   :  { %2595 = vmatpush3.msra.mxu1 %v3149_v10 }
 0x312   :  { %2596 = vmatprep.subr.mxu1 %v3046_v9 }
 0x313   :  { %2597 = vmatpush3.msra.mxu1 %v3155_v11 }
 0x314   :  { %2598 = vmatprep.subr.mxu1 %v3046_v9 }
 0x315   :  { %2599 = vmatpush3.msra.mxu1 %v3159_v12 }
 0x316   :  { %2614 = vmatprep.subr.mxu1 %v3046_v9 }
 0x3ce   :  { %v494_v29 = vpop.f32.mrf.mxu1 }
 0x3cf   :  { %v495_v30 = vadd.f32 %v494_v29, %v3181_v33 }
 0x3d0   :  { %v2580_v31 = vpop.f32.mrf.mxu1 }
 0x3d1   :  { %2768 = vtanh.f32 %v495_v30  ;;  %v2395_v36 = vmul.f32 -1.442695, %v495_v30 }
 0x3d3   :  { %2770 = vpow2.f32 %v2395_v36 }
 0x3de   :  { %v2769_v32 = vpop.eup %2768 }
 0x3df   :  { %507 = vrot.lane.b32.xlu0 %v2769_v32, %s3048_s3 }
 0x3e0   :  { %v2771_v41 = vpop.eup %2770 }
 0x3e1   :  { %v501_v42 = vadd.f32 1.0, %v2771_v41 }
 0x3e3   :  { %2772 = vrcp.f32 %v501_v42 }
 0x3f0   :  { %v2773_v43 = vpop.eup %2772 }
 0x3f1   :  { %v505_v46 = vmul.f32 %v2773_v43, %v3203_v52 }
 0x451   :  { %v508_v44 = vpop.permute.xlu0 %507 }
 0x452   :  { %v510_v45 = vmul.f32 %v2773_v43, %v508_v44 }
 0x454   :  { %512 = vrot.lane.b32.xlu1 %v510_v45, %s3048_s3 }
 0x4c6   :  { %v513_v47 = vpop.permute.xlu1 %512 }
 0x4c7   :  { %v515_v48 = vadd.f32 %v513_v47, %v505_v46 }
 0x4c9   :  { %2774 = vtanh.f32 %v515_v48 }
 0x4d6   :  { %v2775_v33 = vpop.eup %2774 }
 0x4d7   :  { %518 = vrot.lane.b32.xlu0 %v2775_v33, %s3048_s3 }
 0x549   :  { %v519_v49 = vpop.permute.xlu0 %518 }
 0x54a   :  { %v521_v50 = vmul.f32 %v2773_v43, %v519_v49 }
 0x54c   :  { %523 = vrot.lane.b32.xlu1 %v521_v50, %s3049_s18 }
 0x5be   :  { %v524_v51 = vpop.permute.xlu1 %523 }
 0x5bf   :  { %2590 = vmatmul.mubr.msk.f32.vlgmr.msra.gmra.mxu0 %vm322_vm4, %v524_v51 }
 0x5c0   :  { %2604 = vmatpush3.msra.mxu0 %v3144_v8  ;;  %2611 = vmatprep.mubr.msk.f32.mxu0 %vm3047_vm2, %v3046_v9 }
 0x5c1   :  { %2605 = vmatprep.subr.mxu0 %v3046_v9 }
 0x5c2   :  { %2606 = vmatpush3.msra.mxu0 %v3149_v10 }
 0x5c3   :  { %2607 = vmatprep.subr.mxu0 %v3046_v9 }
 0x5c4   :  { %2608 = vmatpush3.msra.mxu0 %v3155_v11 }
 0x5c5   :  { %2609 = vmatprep.subr.mxu0 %v3046_v9 }
 0x5c6   :  { %2610 = vmatpush3.msra.mxu0 %v3159_v12 }
 0x5c7   :  { %2625 = vmatprep.subr.mxu0 %v3046_v9 }
 0x67f   :  { %v597_v52 = vpop.f32.mrf.mxu0 }
 0x680   :  { %v598_v53 = vadd.f32 %v597_v52, %v3184_v34 }
 0x681   :  { %v2591_v54 = vpop.f32.mrf.mxu0 }
 0x682   :  { %2776 = vtanh.f32 %v598_v53  ;;  %v2397_v56 = vmul.f32 -1.442695, %v598_v53 }
 0x684   :  { %2778 = vpow2.f32 %v2397_v56 }
 0x68f   :  { %v2777_v55 = vpop.eup %2776 }
 0x690   :  { %610 = vrot.lane.b32.xlu0 %v2777_v55, %s3048_s3 }
 0x691   :  { %v2779_v57 = vpop.eup %2778 }
 0x692   :  { %v604_v58 = vadd.f32 1.0, %v2779_v57 }
 0x694   :  { %2780 = vrcp.f32 %v604_v58 }
 0x6a1   :  { %v2781_v59 = vpop.eup %2780 }
 0x6a2   :  { %v608_v62 = vmul.f32 %v2781_v59, %v515_v48 }
 0x702   :  { %v611_v60 = vpop.permute.xlu0 %610 }
 0x703   :  { %v613_v61 = vmul.f32 %v2781_v59, %v611_v60 }
 0x705   :  { %615 = vrot.lane.b32.xlu1 %v613_v61, %s3048_s3 }
 0x777   :  { %v616_v63 = vpop.permute.xlu1 %615 }
 0x778   :  { %v618_v0 = vadd.f32 %v616_v63, %v608_v62 }
 0x77a   :  { %2782 = vtanh.f32 %v618_v0 }
 0x787   :  { %v2783_v34 = vpop.eup %2782 }
 0x788   :  { %621 = vrot.lane.b32.xlu0 %v2783_v34, %s3048_s3 }
 0x7fa   :  { %v622_v1 = vpop.permute.xlu0 %621 }
 0x7fb   :  { %v624_v4 = vmul.f32 %v2781_v59, %v622_v1 }
 0x7fd   :  { %626 = vrot.lane.b32.xlu1 %v624_v4, %s3049_s18 }
 0x86f   :  { %v627_v6 = vpop.permute.xlu1 %626 }
 0x870   :  { %2601 = vmatmul.mubr.msk.f32.vlgmr.msra.gmra.mxu1 %vm322_vm4, %v627_v6 }
 0x871   :  { %2615 = vmatpush3.msra.mxu1 %v3144_v8  ;;  %2622 = vmatprep.mubr.msk.f32.mxu1 %vm3047_vm2, %v3046_v9 }
 0x872   :  { %2616 = vmatprep.subr.mxu1 %v3046_v9 }
 0x873   :  { %2617 = vmatpush3.msra.mxu1 %v3149_v10 }
 0x874   :  { %2618 = vmatprep.subr.mxu1 %v3046_v9 }
 0x875   :  { %2619 = vmatpush3.msra.mxu1 %v3155_v11 }
 0x876   :  { %2620 = vmatprep.subr.mxu1 %v3046_v9 }
 0x877   :  { %2621 = vmatpush3.msra.mxu1 %v3159_v12 }
 0x878   :  { %2636 = vmatprep.subr.mxu1 %v3046_v9 }
 0x930   :  { %v700_v7 = vpop.f32.mrf.mxu1 }
 0x931   :  { %v701_v13 = vadd.f32 %v700_v7, %v3187_v35 }
 0x932   :  { %v2602_v14 = vpop.f32.mrf.mxu1 }
 0x933   :  { %2784 = vtanh.f32 %v701_v13  ;;  %v2399_v16 = vmul.f32 -1.442695, %v701_v13 }
 0x935   :  { %2786 = vpow2.f32 %v2399_v16 }
 0x940   :  { %v2785_v15 = vpop.eup %2784 }
 0x941   :  { %713 = vrot.lane.b32.xlu0 %v2785_v15, %s3048_s3 }
 0x942   :  { %v2787_v18 = vpop.eup %2786 }
 0x943   :  { %v707_v19 = vadd.f32 1.0, %v2787_v18 }
 0x945   :  { %2788 = vrcp.f32 %v707_v19 }
 0x952   :  { %v2789_v20 = vpop.eup %2788 }
 0x953   :  { %v711_v26 = vmul.f32 %v2789_v20, %v618_v0 }
 0x9b3   :  { %v714_v23 = vpop.permute.xlu0 %713 }
 0x9b4   :  { %v716_v24 = vmul.f32 %v2789_v20, %v714_v23 }
 0x9b6   :  { %718 = vrot.lane.b32.xlu1 %v716_v24, %s3048_s3 }
 0xa28   :  { %v719_v29 = vpop.permute.xlu1 %718 }
 0xa29   :  { %v721_v30 = vadd.f32 %v719_v29, %v711_v26 }
 0xa2b   :  { %2790 = vtanh.f32 %v721_v30 }
 0xa38   :  { %v2791_v35 = vpop.eup %2790 }
 0xa39   :  { %724 = vrot.lane.b32.xlu0 %v2791_v35, %s3048_s3 }
 0xaab   :  { %v725_v31 = vpop.permute.xlu0 %724 }
 0xaac   :  { %v727_v32 = vmul.f32 %v2789_v20, %v725_v31 }
 0xaae   :  { %729 = vrot.lane.b32.xlu1 %v727_v32, %s3049_s18 }
 0xb20   :  { %v730_v36 = vpop.permute.xlu1 %729 }
 0xb21   :  { %2612 = vmatmul.mubr.msk.f32.vlgmr.msra.gmra.mxu0 %vm322_vm4, %v730_v36 }
 0xb22   :  { %2626 = vmatpush3.msra.mxu0 %v3144_v8  ;;  %2633 = vmatprep.mubr.msk.f32.mxu0 %vm3047_vm2, %v3046_v9 }
 0xb23   :  { %2627 = vmatprep.subr.mxu0 %v3046_v9 }
 0xb24   :  { %2628 = vmatpush3.msra.mxu0 %v3149_v10 }
 0xb25   :  { %2629 = vmatprep.subr.mxu0 %v3046_v9 }
 0xb26   :  { %2630 = vmatpush3.msra.mxu0 %v3155_v11 }
 0xb27   :  { %2631 = vmatprep.subr.mxu0 %v3046_v9 }
 0xb28   :  { %2632 = vmatpush3.msra.mxu0 %v3159_v12 }
 0xb29   :  { %2647 = vmatprep.subr.mxu0 %v3046_v9 }
 0xbe1   :  { %v803_v41 = vpop.f32.mrf.mxu0 }
 0xbe2   :  { %v804_v42 = vadd.f32 %v803_v41, %v3190_v37 }
 0xbe3   :  { %v2613_v43 = vpop.f32.mrf.mxu0 }
 0xbe4   :  { %2792 = vtanh.f32 %v804_v42  ;;  %v2401_v45 = vmul.f32 -1.442695, %v804_v42 }
 0xbe6   :  { %2794 = vpow2.f32 %v2401_v45 }
 0xbf1   :  { %v2793_v44 = vpop.eup %2792 }
 0xbf2   :  { %816 = vrot.lane.b32.xlu0 %v2793_v44, %s3048_s3 }
 0xbf3   :  { %v2795_v46 = vpop.eup %2794 }
 0xbf4   :  { %v810_v47 = vadd.f32 1.0, %v2795_v46 }
 0xbf6   :  { %2796 = vrcp.f32 %v810_v47 }
 0xc03   :  { %v2797_v48 = vpop.eup %2796 }
 0xc04   :  { %v814_v50 = vmul.f32 %v2797_v48, %v721_v30 }
 0xc64   :  { %v817_v33 = vpop.permute.xlu0 %816 }
 0xc65   :  { %v819_v49 = vmul.f32 %v2797_v48, %v817_v33 }
 0xc67   :  { %821 = vrot.lane.b32.xlu1 %v819_v49, %s3048_s3 }
 0xcd9   :  { %v822_v51 = vpop.permute.xlu1 %821 }
 0xcda   :  { %v824_v52 = vadd.f32 %v822_v51, %v814_v50  ;;  %v3362_v51 = vld [vmem:[#allocation11 + $0x10] sm:$0xff] }
 0xcdc   :  { %2798 = vtanh.f32 %v824_v52 }
 0xce9   :  { %v2799_v37 = vpop.eup %2798 }
 0xcea   :  { %827 = vrot.lane.b32.xlu0 %v2799_v37, %s3048_s3  ;;  %v3373_v37 = vld [vmem:[#allocation11] sm:$0xff] }
 0xd5c   :  { %v828_v53 = vpop.permute.xlu0 %827 }
 0xd5d   :  { %v830_v54 = vmul.f32 %v2797_v48, %v828_v53 }
 0xd5f   :  { %832 = vrot.lane.b32.xlu1 %v830_v54, %s3049_s18 }
 0xdd1   :  { %v833_v55 = vpop.permute.xlu1 %832 }
 0xdd2   :  { %2623 = vmatmul.mubr.msk.f32.vlgmr.msra.gmra.mxu1 %vm322_vm4, %v833_v55 }
 0xdd3   :  { %2637 = vmatpush3.msra.mxu1 %v3144_v8  ;;  %2644 = vmatprep.mubr.msk.f32.mxu1 %vm3047_vm2, %v3046_v9 }
 0xdd4   :  { %2638 = vmatprep.subr.mxu1 %v3046_v9 }
 0xdd5   :  { %2639 = vmatpush3.msra.mxu1 %v3149_v10 }
 0xdd6   :  { %2640 = vmatprep.subr.mxu1 %v3046_v9 }
 0xdd7   :  { %2641 = vmatpush3.msra.mxu1 %v3155_v11 }
 0xdd8   :  { %2642 = vmatprep.subr.mxu1 %v3046_v9 }
 0xdd9   :  { %2643 = vmatpush3.msra.mxu1 %v3159_v12 }
 0xdda   :  { %2658 = vmatprep.subr.mxu1 %v3046_v9 }
 0xe92   :  { %v906_v56 = vpop.f32.mrf.mxu1 }
 0xe93   :  { %v907_v8 = vadd.f32 %v906_v56, %v3193_v38 }
 0xe94   :  { %v2624_v57 = vpop.f32.mrf.mxu1 }
 0xe95   :  { %2800 = vtanh.f32 %v907_v8  ;;  %v2403_v59 = vmul.f32 -1.442695, %v907_v8  ;;  %v1149_v8 = vrot.slane %v3239_v3, 7 }
 0xe97   :  { %2802 = vpow2.f32 %v2403_v59  ;;  %v1150_v57 = vsel %vm319_vm3, %v1149_v8, %v3237_v2 }
 0xea2   :  { %v2801_v58 = vpop.eup %2800 }
 0xea3   :  { %919 = vrot.lane.b32.xlu0 %v2801_v58, %s3048_s3 }
 0xea4   :  { %v2803_v10 = vpop.eup %2802 }
 0xea5   :  { %v913_v60 = vadd.f32 1.0, %v2803_v10 }
 0xea7   :  { %2804 = vrcp.f32 %v913_v60 }
 0xeb4   :  { %v2805_v11 = vpop.eup %2804 }
 0xeb5   :  { %v917_v12 = vmul.f32 %v2805_v11, %v824_v52  ;;  %v3367_v52 = vld [vmem:[#allocation11 + $0x8] sm:$0xff] }
 0xf15   :  { %v920_v61 = vpop.permute.xlu0 %919 }
 0xf16   :  { %v922_v62 = vmul.f32 %v2805_v11, %v920_v61 }
 0xf18   :  { %924 = vrot.lane.b32.xlu1 %v922_v62, %s3048_s3 }
 0xf8a   :  { %v925_v63 = vpop.permute.xlu1 %924 }
 0xf8b   :  { %v927_v0 = vadd.f32 %v925_v63, %v917_v12 }
 0xf8d   :  { %2806 = vtanh.f32 %v927_v0 }
 0xf9a   :  { %v2807_v38 = vpop.eup %2806 }
 0xf9b   :  { %930 = vrot.lane.b32.xlu0 %v2807_v38, %s3048_s3 }
0x100d   :  { %v931_v34 = vpop.permute.xlu0 %930 }
0x100e   :  { %v933_v1 = vmul.f32 %v2805_v11, %v931_v34 }
0x1010   :  { %935 = vrot.lane.b32.xlu1 %v933_v1, %s3049_s18 }
0x1082   :  { %v936_v4 = vpop.permute.xlu1 %935 }
0x1083   :  { %2634 = vmatmul.mubr.msk.f32.vlgmr.msra.gmra.mxu0 %vm322_vm4, %v936_v4 }
0x1084   :  { %2655 = vmatprep.mubr.msk.f32.mxu0 %vm3047_vm2, %v3046_v9 }
0x1143   :  { %v1009_v6 = vpop.f32.mrf.mxu0 }
0x1144   :  { %v1010_v7 = vadd.f32 %v1009_v6, %v3196_v39 }
0x1145   :  { %v2635_v13 = vpop.f32.mrf.mxu0 }
0x1146   :  { %2808 = vtanh.f32 %v1010_v7  ;;  %v2405_v15 = vmul.f32 -1.442695, %v1010_v7 }
0x1148   :  { %2810 = vpow2.f32 %v2405_v15 }
0x1153   :  { %v2809_v14 = vpop.eup %2808 }
0x1154   :  { %1022 = vrot.lane.b32.xlu0 %v2809_v14, %s3048_s3 }
0x1155   :  { %v2811_v16 = vpop.eup %2810 }
0x1156   :  { %v1016_v18 = vadd.f32 1.0, %v2811_v16 }
0x1158   :  { %2812 = vrcp.f32 %v1016_v18 }
0x1165   :  { %v2813_v19 = vpop.eup %2812 }
0x1166   :  { %v1020_v24 = vmul.f32 %v2813_v19, %v927_v0 }
0x11c6   :  { %v1023_v20 = vpop.permute.xlu0 %1022 }
0x11c7   :  { %v1025_v23 = vmul.f32 %v2813_v19, %v1023_v20 }
0x11c9   :  { %1027 = vrot.lane.b32.xlu1 %v1025_v23, %s3048_s3 }
0x123b   :  { %v1028_v26 = vpop.permute.xlu1 %1027 }
0x123c   :  { %v1030_v29 = vadd.f32 %v1028_v26, %v1020_v24 }
0x123e   :  { %2814 = vtanh.f32 %v1030_v29 }
0x124b   :  { %v2815_v39 = vpop.eup %2814 }
0x124c   :  { %1033 = vrot.lane.b32.xlu0 %v2815_v39, %s3048_s3 }
0x12be   :  { %v1034_v30 = vpop.permute.xlu0 %1033 }
0x12bf   :  { %v1036_v35 = vmul.f32 %v2813_v19, %v1034_v30 }
0x12c1   :  { %1038 = vrot.lane.b32.xlu1 %v1036_v35, %s3049_s18 }
0x1333   :  { %v1039_v31 = vpop.permute.xlu1 %1038 }
0x1334   :  { %2645 = vmatmul.mubr.msk.f32.vlgmr.msra.gmra.mxu1 %vm322_vm4, %v1039_v31 }
0x1335   :  { %2666 = vmatprep.mubr.msk.f32.mxu1 %vm3047_vm2, %v3046_v9 }
0x13f4   :  { %v1112_v32 = vpop.f32.mrf.mxu1 }
0x13f5   :  { %v1113_v36 = vadd.f32 %v1112_v32, %v3199_v40  ;;  %v3360_v40 = vld [vmem:[#allocation11 + $0x18] sm:$0xff] }
0x13f6   :  { %v2646_v41 = vpop.f32.mrf.mxu1  ;;  %2648 = vmatpush3.msra.mxu0 %v3360_v40  ;;  %2659 = vmatpush3.msra.mxu1 %v3360_v40 }
0x13f7   :  { %2816 = vtanh.f32 %v1113_v36  ;;  %v2407_v43 = vmul.f32 -1.442695, %v1113_v36  ;;  %2649 = vmatprep.subr.mxu0 %v3046_v9  ;;  %2660 = vmatprep.subr.mxu1 %v3046_v9 }
0x13f8   :  { %2650 = vmatpush3.msra.mxu0 %v3362_v51  ;;  %2661 = vmatpush3.msra.mxu1 %v3362_v51 }
0x13f9   :  { %2818 = vpow2.f32 %v2407_v43  ;;  %2651 = vmatprep.subr.mxu0 %v3046_v9  ;;  %2662 = vmatprep.subr.mxu1 %v3046_v9 }
0x13fa   :  { %2652 = vmatpush3.msra.mxu0 %v3367_v52  ;;  %2663 = vmatpush3.msra.mxu1 %v3367_v52 }
0x13fb   :  { %2653 = vmatprep.subr.mxu0 %v3046_v9  ;;  %2664 = vmatprep.subr.mxu1 %v3046_v9 }
0x13fc   :  { %2654 = vmatpush3.msra.mxu0 %v3373_v37  ;;  %2665 = vmatpush3.msra.mxu1 %v3373_v37 }
0x13fd   :  { %2669 = vmatprep.subr.mxu0 %v3046_v9  ;;  %2680 = vmatprep.subr.mxu1 %v3046_v9 }
0x1404   :  { %v2817_v42 = vpop.eup %2816 }
0x1405   :  { %1125 = vrot.lane.b32.xlu0 %v2817_v42, %s3048_s3 }
0x1406   :  { %v2819_v44 = vpop.eup %2818 }
0x1407   :  { %v1119_v45 = vadd.f32 1.0, %v2819_v44 }
0x1409   :  { %2820 = vrcp.f32 %v1119_v45 }
0x1416   :  { %v2821_v46 = vpop.eup %2820 }
0x1417   :  { %v1123_v33 = vmul.f32 %v2821_v46, %v1030_v29 }
0x1477   :  { %v1126_v47 = vpop.permute.xlu0 %1125 }
0x1478   :  { %v1128_v48 = vmul.f32 %v2821_v46, %v1126_v47 }
0x147a   :  { %1130 = vrot.lane.b32.xlu1 %v1128_v48, %s3048_s3 }
0x14ec   :  { %v1131_v49 = vpop.permute.xlu1 %1130 }
0x14ed   :  { %v1133_v50 = vadd.f32 %v1131_v49, %v1123_v33 }
0x14ef   :  { %2822 = vtanh.f32 %v1133_v50 }
0x14fc   :  { %v2823_v53 = vpop.eup %2822 }
0x14fd   :  { %1136 = vrot.lane.b32.xlu0 %v2823_v53, %s3048_s3 }
0x156f   :  { %v1137_v54 = vpop.permute.xlu0 %1136 }
0x1570   :  { %v1139_v55 = vmul.f32 %v2821_v46, %v1137_v54 }
0x1572   :  { %1145 = vrot.lane.b32.xlu1 %v1139_v55, %s3049_s18 }
0x15e4   :  { %v1146_v56 = vpop.permute.xlu1 %1145 }
0x15e5   :  { %2656 = vmatmul.mubr.msk.f32.vlgmr.msra.gmra.mxu0 %vm322_vm4, %v1146_v56 }
0x15e6   :  { %2670 = vmatpush3.msra.mxu0 %v3360_v40  ;;  %2677 = vmatprep.mubr.msk.f32.mxu0 %vm3047_vm2, %v3046_v9 }
0x15e7   :  { %2671 = vmatprep.subr.mxu0 %v3046_v9 }
0x15e8   :  { %2672 = vmatpush3.msra.mxu0 %v3362_v51 }
0x15e9   :  { %2673 = vmatprep.subr.mxu0 %v3046_v9 }
0x15ea   :  { %2674 = vmatpush3.msra.mxu0 %v3367_v52 }
0x15eb   :  { %2675 = vmatprep.subr.mxu0 %v3046_v9 }
0x15ec   :  { %2676 = vmatpush3.msra.mxu0 %v3373_v37 }
0x15ed   :  { %2691 = vmatprep.subr.mxu0 %v3046_v9 }
0x16a5   :  { %v1220_v58 = vpop.f32.mrf.mxu0 }
0x16a6   :  { %v1221_v59 = vadd.f32 %v1220_v58, %v1150_v57 }
0x16a7   :  { %v2657_v10 = vpop.f32.mrf.mxu0 }
0x16a8   :  { %2824 = vtanh.f32 %v1221_v59  ;;  %v2409_v11 = vmul.f32 -1.442695, %v1221_v59 }
0x16aa   :  { %2826 = vpow2.f32 %v2409_v11 }
0x16b5   :  { %v2825_v60 = vpop.eup %2824 }
0x16b6   :  { %1233 = vrot.lane.b32.xlu0 %v2825_v60, %s3048_s3 }
0x16b7   :  { %v2827_v61 = vpop.eup %2826 }
0x16b8   :  { %v1227_v62 = vadd.f32 1.0, %v2827_v61 }
0x16ba   :  { %2828 = vrcp.f32 %v1227_v62 }
0x16c7   :  { %v2829_v12 = vpop.eup %2828 }
0x16c8   :  { %v1231_v3 = vmul.f32 %v2829_v12, %v1133_v50 }
0x1728   :  { %v1234_v63 = vpop.permute.xlu0 %1233 }
0x1729   :  { %v1236_v0 = vmul.f32 %v2829_v12, %v1234_v63 }
0x172b   :  { %1238 = vrot.lane.b32.xlu1 %v1236_v0, %s3048_s3 }
0x179d   :  { %v1239_v38 = vpop.permute.xlu1 %1238 }
0x179e   :  { %v1241_v2 = vadd.f32 %v1239_v38, %v1231_v3 }
0x17a0   :  { %2830 = vtanh.f32 %v1241_v2 }
0x17ad   :  { %v2831_v34 = vpop.eup %2830 }
0x17ae   :  { %1244 = vrot.lane.b32.xlu0 %v2831_v34, %s3048_s3 }
0x1820   :  { %v1245_v1 = vpop.permute.xlu0 %1244 }
0x1821   :  { %v3403_v4 = vmul.f32 %v2829_v12, %v1245_v1 }
0x1823   :  { %1288 = vrot.lane.b32.xlu1 %v3403_v4, %s3049_s18 }
0x1895   :  { %v1289_v6 = vpop.permute.xlu1 %1288 }
0x1896   :  { %2667 = vmatmul.mubr.msk.f32.vlgmr.msra.gmra.mxu1 %vm322_vm4, %v1289_v6 }
0x1897   :  { %2681 = vmatpush3.msra.mxu1 %v3360_v40  ;;  %2688 = vmatprep.mubr.msk.f32.mxu1 %vm3047_vm2, %v3046_v9 }
0x1898   :  { %2682 = vmatprep.subr.mxu1 %v3046_v9 }
0x1899   :  { %2683 = vmatpush3.msra.mxu1 %v3362_v51 }
0x189a   :  { %2684 = vmatprep.subr.mxu1 %v3046_v9 }
0x189b   :  { %2685 = vmatpush3.msra.mxu1 %v3367_v52 }
0x189c   :  { %2686 = vmatprep.subr.mxu1 %v3046_v9 }
0x189d   :  { %2687 = vmatpush3.msra.mxu1 %v3373_v37 }
0x189e   :  { %2702 = vmatprep.subr.mxu1 %v3046_v9 }
0x1956   :  { %v1361_v7 = vpop.f32.mrf.mxu1 }
0x1957   :  { %v1362_v13 = vadd.f32 %v1361_v7, %v3244_v5 }
0x1958   :  { %v2668_v14 = vpop.f32.mrf.mxu1 }
0x1959   :  { %2832 = vtanh.f32 %v1362_v13  ;;  %v2411_v16 = vmul.f32 -1.442695, %v1362_v13 }
0x195b   :  { %2834 = vpow2.f32 %v2411_v16 }
0x1966   :  { %v2833_v15 = vpop.eup %2832 }
0x1967   :  { %1374 = vrot.lane.b32.xlu0 %v2833_v15, %s3048_s3 }
0x1968   :  { %v2835_v18 = vpop.eup %2834 }
0x1969   :  { %v1368_v19 = vadd.f32 1.0, %v2835_v18 }
0x196b   :  { %2836 = vrcp.f32 %v1368_v19 }
0x1978   :  { %v2837_v20 = vpop.eup %2836 }
0x1979   :  { %v1372_v26 = vmul.f32 %v2837_v20, %v1241_v2 }
0x19d9   :  { %v1375_v23 = vpop.permute.xlu0 %1374 }
0x19da   :  { %v1377_v24 = vmul.f32 %v2837_v20, %v1375_v23 }
0x19dc   :  { %1379 = vrot.lane.b32.xlu1 %v1377_v24, %s3048_s3 }
0x1a4e   :  { %v1380_v29 = vpop.permute.xlu1 %1379 }
0x1a4f   :  { %v1382_v39 = vadd.f32 %v1380_v29, %v1372_v26 }
0x1a51   :  { %2838 = vtanh.f32 %v1382_v39 }
0x1a5e   :  { %v2839_v5 = vpop.eup %2838 }
0x1a5f   :  { %1385 = vrot.lane.b32.xlu0 %v2839_v5, %s3048_s3 }
0x1ad1   :  { %v1386_v30 = vpop.permute.xlu0 %1385 }
0x1ad2   :  { %v3422_v35 = vmul.f32 %v2837_v20, %v1386_v30 }
0x1ad4   :  { %1428 = vrot.lane.b32.xlu1 %v3422_v35, %s3049_s18 }
0x1b46   :  { %v1429_v31 = vpop.permute.xlu1 %1428 }
0x1b47   :  { %2678 = vmatmul.mubr.msk.f32.vlgmr.msra.gmra.mxu0 %vm322_vm4, %v1429_v31 }
0x1b48   :  { %2692 = vmatpush3.msra.mxu0 %v3360_v40  ;;  %2699 = vmatprep.mubr.msk.f32.mxu0 %vm3047_vm2, %v3046_v9 }
0x1b49   :  { %2693 = vmatprep.subr.mxu0 %v3046_v9 }
0x1b4a   :  { %2694 = vmatpush3.msra.mxu0 %v3362_v51 }
0x1b4b   :  { %2695 = vmatprep.subr.mxu0 %v3046_v9 }
0x1b4c   :  { %2696 = vmatpush3.msra.mxu0 %v3367_v52 }
0x1b4d   :  { %2697 = vmatprep.subr.mxu0 %v3046_v9 }
0x1b4e   :  { %2698 = vmatpush3.msra.mxu0 %v3373_v37 }
0x1b4f   :  { %2713 = vmatprep.subr.mxu0 %v3046_v9 }
0x1c07   :  { %v1502_v32 = vpop.f32.mrf.mxu0 }
0x1c08   :  { %v1503_v36 = vadd.f32 %v1502_v32, %v3253_v17 }
0x1c09   :  { %v2679_v41 = vpop.f32.mrf.mxu0 }
0x1c0a   :  { %2840 = vtanh.f32 %v1503_v36  ;;  %v2413_v43 = vmul.f32 -1.442695, %v1503_v36 }
0x1c0c   :  { %2842 = vpow2.f32 %v2413_v43 }
0x1c17   :  { %v2841_v42 = vpop.eup %2840 }
0x1c18   :  { %1515 = vrot.lane.b32.xlu0 %v2841_v42, %s3048_s3 }
0x1c19   :  { %v2843_v44 = vpop.eup %2842 }
0x1c1a   :  { %v1509_v45 = vadd.f32 1.0, %v2843_v44 }
0x1c1c   :  { %2844 = vrcp.f32 %v1509_v45 }
0x1c29   :  { %v2845_v46 = vpop.eup %2844 }
0x1c2a   :  { %v1513_v33 = vmul.f32 %v2845_v46, %v1382_v39 }
0x1c8a   :  { %v1516_v47 = vpop.permute.xlu0 %1515 }
0x1c8b   :  { %v1518_v48 = vmul.f32 %v2845_v46, %v1516_v47 }
0x1c8d   :  { %1520 = vrot.lane.b32.xlu1 %v1518_v48, %s3048_s3 }
0x1cff   :  { %v1521_v49 = vpop.permute.xlu1 %1520 }
0x1d00   :  { %v1523_v50 = vadd.f32 %v1521_v49, %v1513_v33 }
0x1d02   :  { %2846 = vtanh.f32 %v1523_v50 }
0x1d0f   :  { %v2847_v17 = vpop.eup %2846 }
0x1d10   :  { %1526 = vrot.lane.b32.xlu0 %v2847_v17, %s3048_s3 }
0x1d82   :  { %v1527_v53 = vpop.permute.xlu0 %1526 }
0x1d83   :  { %v3441_v54 = vmul.f32 %v2845_v46, %v1527_v53 }
0x1d85   :  { %1569 = vrot.lane.b32.xlu1 %v3441_v54, %s3049_s18 }
0x1df7   :  { %v1570_v55 = vpop.permute.xlu1 %1569 }
0x1df8   :  { %2689 = vmatmul.mubr.msk.f32.vlgmr.msra.gmra.mxu1 %vm322_vm4, %v1570_v55 }
0x1df9   :  { %2703 = vmatpush3.msra.mxu1 %v3360_v40  ;;  %2710 = vmatprep.mubr.msk.f32.mxu1 %vm3047_vm2, %v3046_v9 }
0x1dfa   :  { %2704 = vmatprep.subr.mxu1 %v3046_v9 }
0x1dfb   :  { %2705 = vmatpush3.msra.mxu1 %v3362_v51 }
0x1dfc   :  { %2706 = vmatprep.subr.mxu1 %v3046_v9 }
0x1dfd   :  { %2707 = vmatpush3.msra.mxu1 %v3367_v52 }
0x1dfe   :  { %2708 = vmatprep.subr.mxu1 %v3046_v9 }
0x1dff   :  { %2709 = vmatpush3.msra.mxu1 %v3373_v37 }
0x1e00   :  { %2724 = vmatprep.subr.mxu1 %v3046_v9 }
0x1eb8   :  { %v1643_v56 = vpop.f32.mrf.mxu1 }
0x1eb9   :  { %v1644_v8 = vadd.f32 %v1643_v56, %v3259_v21 }
0x1eba   :  { %v2690_v57 = vpop.f32.mrf.mxu1 }
0x1ebb   :  { %2848 = vtanh.f32 %v1644_v8  ;;  %v2415_v59 = vmul.f32 -1.442695, %v1644_v8 }
0x1ebd   :  { %2850 = vpow2.f32 %v2415_v59 }
0x1ec8   :  { %v2849_v58 = vpop.eup %2848 }
0x1ec9   :  { %1656 = vrot.lane.b32.xlu0 %v2849_v58, %s3048_s3 }
0x1eca   :  { %v2851_v10 = vpop.eup %2850 }
0x1ecb   :  { %v1650_v60 = vadd.f32 1.0, %v2851_v10 }
0x1ecd   :  { %2852 = vrcp.f32 %v1650_v60 }
0x1eda   :  { %v2853_v11 = vpop.eup %2852 }
0x1edb   :  { %v1654_v12 = vmul.f32 %v2853_v11, %v1523_v50 }
0x1f3b   :  { %v1657_v61 = vpop.permute.xlu0 %1656 }
0x1f3c   :  { %v1659_v62 = vmul.f32 %v2853_v11, %v1657_v61 }
0x1f3e   :  { %1661 = vrot.lane.b32.xlu1 %v1659_v62, %s3048_s3 }
0x1fb0   :  { %v1662_v63 = vpop.permute.xlu1 %1661 }
0x1fb1   :  { %v1664_v0 = vadd.f32 %v1662_v63, %v1654_v12 }
0x1fb3   :  { %2854 = vtanh.f32 %v1664_v0 }
0x1fc0   :  { %v2855_v21 = vpop.eup %2854 }
0x1fc1   :  { %1667 = vrot.lane.b32.xlu0 %v2855_v21, %s3048_s3 }
0x2033   :  { %v1668_v3 = vpop.permute.xlu0 %1667 }
0x2034   :  { %v3460_v38 = vmul.f32 %v2853_v11, %v1668_v3 }
0x2036   :  { %1710 = vrot.lane.b32.xlu1 %v3460_v38, %s3049_s18 }
0x20a8   :  { %v1711_v2 = vpop.permute.xlu1 %1710 }
0x20a9   :  { %2700 = vmatmul.mubr.msk.f32.vlgmr.msra.gmra.mxu0 %vm322_vm4, %v1711_v2  ;;  %v3050_v2 = vmov 1966171168  }
0x20aa   :  { %2714 = vmatpush3.msra.mxu0 %v3360_v40  ;;  %2721 = vmatprep.mubr.msk.f32.mxu0 %vm3047_vm2, %v3046_v9 }
0x20ab   :  { %2715 = vmatprep.subr.mxu0 %v3046_v9 }
0x20ac   :  { %2716 = vmatpush3.msra.mxu0 %v3362_v51 }
0x20ad   :  { %2717 = vmatprep.subr.mxu0 %v3046_v9 }
0x20ae   :  { %2718 = vmatpush3.msra.mxu0 %v3367_v52 }
0x20af   :  { %2719 = vmatprep.subr.mxu0 %v3046_v9 }
0x20b0   :  { %2720 = vmatpush3.msra.mxu0 %v3373_v37 }
0x2169   :  { %v1784_v34 = vpop.f32.mrf.mxu0 }
0x216a   :  { %v1785_v1 = vadd.f32 %v1784_v34, %v3262_v22  ;;  %v1250_v34 = vunpack.c.l.s4 %v3050_v2 }
0x216b   :  { %v2701_v6 = vpop.f32.mrf.mxu0 }
0x216c   :  { %2856 = vtanh.f32 %v1785_v1  ;;  %v2417_v13 = vmul.f32 -1.442695, %v1785_v1  ;;  %v1252_v1 = vlaneseq  ;;  %v1251_v6 = vunpack.c.0.s8 %v1250_v34  ;;  %v119_v34 = vld [vmem:[#allocation12 + $0x18] sm:$0xff] }
0x216d   :  { %2735 = vmatprep.subr.mxu0 %v119_v34 }
0x216e   :  { %2858 = vpow2.f32 %v2417_v13 }
0x2179   :  { %v2857_v7 = vpop.eup %2856 }
0x217a   :  { %1797 = vrot.lane.b32.xlu0 %v2857_v7, %s3048_s3  ;;  %v1253_v7 = vshrl.u32 %v1252_v1, 7  ;;  %v118_v1 = vld [vmem:[#allocation12 + $0x10] sm:$0xff] }
0x217b   :  { %v2859_v14 = vpop.eup %2858 }
0x217c   :  { %v1791_v15 = vadd.f32 1.0, %v2859_v14  ;;  %v3512_v13 = vsub.s32 %v1251_v6, %v1253_v7 }
0x217e   :  { %2860 = vrcp.f32 %v1791_v15 }
0x218b   :  { %v2861_v16 = vpop.eup %2860 }
0x218c   :  { %v1795_v20 = vmul.f32 %v2861_v16, %v1664_v0 }
0x21ec   :  { %v1798_v18 = vpop.permute.xlu0 %1797 }
0x21ed   :  { %v1800_v19 = vmul.f32 %v2861_v16, %v1798_v18  ;;  %v1537_v18 = vrot.slane %v3441_v54, %v3512_v13 }
0x21ef   :  { %1802 = vrot.lane.b32.xlu1 %v1800_v19, %s3048_s3 }
0x2261   :  { %v1803_v23 = vpop.permute.xlu1 %1802 }
0x2262   :  { %v1805_v24 = vadd.f32 %v1803_v23, %v1795_v20  ;;  %v3522_v20 = vsub.s32 0, %v1253_v7  ;;  %v1545_v23 = vrot.slane %v1537_v18, %v3512_v13  ;;  %v117_v7 = vld [vmem:[#allocation12 + $0x8] sm:$0xff] }
0x2264   :  { %2862 = vtanh.f32 %v1805_v24  ;;  %v1556_v54 = vrot.slane %v1545_v23, %v3522_v20 }
0x2271   :  { %v2863_v22 = vpop.eup %2862 }
0x2272   :  { %1808 = vrot.lane.b32.xlu0 %v2863_v22, %s3048_s3 }
0x22e4   :  { %v1809_v26 = vpop.permute.xlu0 %1808 }
0x22e5   :  { %v3478_v29 = vmul.f32 %v2861_v16, %v1809_v26 }
0x22e7   :  { %1851 = vrot.lane.b32.xlu1 %v3478_v29, %s3049_s18 }
0x2359   :  { %v1852_v39 = vpop.permute.xlu1 %1851 }
0x235a   :  { %2711 = vmatmul.mubr.msk.f32.vlgmr.msra.gmra.mxu1 %vm322_vm4, %v1852_v39 }
0x235b   :  { %2725 = vmatpush3.msra.mxu1 %v3360_v40  ;;  %2732 = vmatprep.mubr.msk.f32.mxu1 %vm3047_vm2, %v3046_v9 }
0x235c   :  { %2726 = vmatprep.subr.mxu1 %v3046_v9 }
0x235d   :  { %2727 = vmatpush3.msra.mxu1 %v3362_v51 }
0x235e   :  { %2728 = vmatprep.subr.mxu1 %v3046_v9 }
0x235f   :  { %2729 = vmatpush3.msra.mxu1 %v3367_v52 }
0x2360   :  { %2730 = vmatprep.subr.mxu1 %v3046_v9 }
0x2361   :  { %2731 = vmatpush3.msra.mxu1 %v3373_v37 }
0x241a   :  { %v1925_v5 = vpop.f32.mrf.mxu1 }
0x241b   :  { %v1926_v30 = vadd.f32 %v1925_v5, %v3267_v25 }
0x241c   :  { %v2712_v31 = vpop.f32.mrf.mxu1 }
0x241d   :  { %2864 = vtanh.f32 %v1926_v30  ;;  %v2419_v32 = vmul.f32 -1.442695, %v1926_v30 }
0x241f   :  { %2866 = vpow2.f32 %v2419_v32 }
0x242a   :  { %v2865_v40 = vpop.eup %2864 }
0x242b   :  { %1938 = vrot.lane.b32.xlu0 %v2865_v40, %s3048_s3 }
0x242c   :  { %v2867_v36 = vpop.eup %2866 }
0x242d   :  { %v1932_v51 = vadd.f32 1.0, %v2867_v36 }
0x242f   :  { %2868 = vrcp.f32 %v1932_v51 }
0x243c   :  { %v2869_v41 = vpop.eup %2868 }
0x243d   :  { %v1936_v9 = vmul.f32 %v2869_v41, %v1805_v24  ;;  %v1819_v24 = vrot.slane %v3478_v29, %v3512_v13  ;;  %v1538_v29 = vcombine.high %v1537_v18, %v1537_v18 }
0x243f   :  { %v1827_v22 = vrot.slane %v1819_v24, %v3512_v13  ;;  %v1820_v32 = vcombine.high %v1819_v24, %v1819_v24  ;;  %v1552_v51 = vrot.slane %v1538_v29, %v3512_v13  ;;  %v2424_v29 = vld [vmem:[%s3623_s8] ss:$0 sm:$0xff] }
0x2441   :  { %v1838_v30 = vrot.slane %v1827_v22, %v3522_v20 }
0x249d   :  { %v1939_v42 = vpop.permute.xlu0 %1938 }
0x249e   :  { %v1941_v52 = vmul.f32 %v2869_v41, %v1939_v42  ;;  %v1560_v42 = vrot.slane %v1552_v51, %v3522_v20 }
0x24a0   :  { %1943 = vrot.lane.b32.xlu1 %v1941_v52, %s3048_s3  ;;  %v1834_v52 = vrot.slane %v1820_v32, %v3512_v13 }
0x2512   :  { %v1944_v37 = vpop.permute.xlu1 %1943 }
0x2513   :  { %v1946_v43 = vadd.f32 %v1944_v37, %v1936_v9  ;;  %v1842_v9 = vrot.slane %v1834_v52, %v3522_v20 }
0x2515   :  { %2870 = vtanh.f32 %v1946_v43 }
0x2522   :  { %v2871_v25 = vpop.eup %2870 }
0x2523   :  { %1949 = vrot.lane.b32.xlu0 %v2871_v25, %s3048_s3 }
0x2595   :  { %v1950_v44 = vpop.permute.xlu0 %1949 }
0x2596   :  { %v3496_v45 = vmul.f32 %v2869_v41, %v1950_v44 }
0x2598   :  { %1992 = vrot.lane.b32.xlu1 %v3496_v45, %s3049_s18 }
0x260a   :  { %v1993_v46 = vpop.permute.xlu1 %1992 }
0x260b   :  { %2722 = vmatmul.mubr.msk.f32.vlgmr.msra.gmra.mxu0 %vm322_vm4, %v1993_v46 }
0x260c   :  { %2736 = vmatpush3.msra.mxu0 %v119_v34 }
0x260d   :  { %2737 = vmatprep.subr.mxu0 %v118_v1 }
0x260e   :  { %2738 = vmatpush3.msra.mxu0 %v118_v1 }
0x260f   :  { %2739 = vmatprep.subr.mxu0 %v117_v7 }
0x2610   :  { %2740 = vmatpush3.msra.mxu0 %v117_v7 }
0x26cb   :  { %v2066_v47 = vpop.f32.mrf.mxu0 }
0x26cc   :  { %v2067_v48 = vadd.f32 %v2066_v47, %v3271_v27 }
0x26cd   :  { %v2723_v33 = vpop.f32.mrf.mxu0 }
0x26ce   :  { %2872 = vtanh.f32 %v2067_v48  ;;  %v2421_v50 = vmul.f32 -1.442695, %v2067_v48  ;;  %v1396_v33 = vrot.slane %v3422_v35, %v3512_v13 }
0x26d0   :  { %2874 = vpow2.f32 %v2421_v50  ;;  %v1404_v50 = vrot.slane %v1396_v33, %v3512_v13 }
0x26d2   :  { %v1415_v35 = vrot.slane %v1404_v50, %v3522_v20 }
0x26db   :  { %v2873_v49 = vpop.eup %2872 }
0x26dc   :  { %2079 = vrot.lane.b32.xlu0 %v2873_v49, %s3048_s3 }
0x26dd   :  { %v2875_v17 = vpop.eup %2874 }
0x26de   :  { %v2073_v53 = vadd.f32 1.0, %v2875_v17  ;;  %v1678_v17 = vrot.slane %v3460_v38, %v3512_v13 }
0x26e0   :  { %2876 = vrcp.f32 %v2073_v53 }
0x26ed   :  { %v2877_v55 = vpop.eup %2876 }
0x26ee   :  { %v2077_v57 = vmul.f32 %v2877_v55, %v1946_v43 }
0x274e   :  { %v2080_v56 = vpop.permute.xlu0 %2079 }
0x274f   :  { %v2082_v8 = vmul.f32 %v2877_v55, %v2080_v56  ;;  %v1686_v56 = vrot.slane %v1678_v17, %v3512_v13 }
0x2751   :  { %2084 = vrot.lane.b32.xlu1 %v2082_v8, %s3048_s3  ;;  %v1960_v8 = vrot.slane %v3496_v45, %v3512_v13 }
0x2753   :  { %v1968_v38 = vrot.slane %v1960_v8, %v3512_v13 }
0x2755   :  { %v1979_v45 = vrot.slane %v1968_v38, %v3522_v20 }
0x27c3   :  { %v2085_v58 = vpop.permute.xlu1 %2084 }
0x27c4   :  { %v3504_v59 = vadd.f32 %v2085_v58, %v2077_v57  ;;  %v1397_v58 = vcombine.high %v1396_v33, %v1396_v33 }
0x27c6   :  { %2878 = vtanh.f32 %v3504_v59 }
0x27d3   :  { %v2879_v27 = vpop.eup %2878 }
0x27d4   :  { %2090 = vrot.lane.b32.xlu0 %v2879_v27, %s3048_s3 }
0x2846   :  { %v2091_v10 = vpop.permute.xlu0 %2090 }
0x2847   :  { %v2093_v60 = vmul.f32 %v2877_v55, %v2091_v10  ;;  %v1679_v10 = vcombine.high %v1678_v17, %v1678_v17 }
0x2849   :  { %2133 = vrot.lane.b32.xlu1 %v2093_v60, %s3049_s18  ;;  %v2101_v26 = vrot.slane %v2093_v60, %v3512_v13  ;;  %v1411_v60 = vrot.slane %v1397_v58, %v3512_v13 }
0x284b   :  { %v2109_v5 = vrot.slane %v2101_v26, %v3512_v13  ;;  %v2102_v41 = vcombine.high %v2101_v26, %v2101_v26 }
0x284d   :  { %v2120_v31 = vrot.slane %v2109_v5, %v3522_v20  ;;  %v2116_v37 = vrot.slane %v2102_v41, %v3512_v13 }
0x284f   :  { %v2124_v43 = vrot.slane %v2116_v37, %v3522_v20 }
0x28bb   :  { %v2134_v11 = vpop.permute.xlu1 %2133 }
0x28bc   :  { %2733 = vmatmul.mubr.msk.f32.vlgmr.msra.gmra.mxu1 %vm322_vm4, %v2134_v11 }
0x297c   :  { %v2207_v61 = vpop.f32.mrf.mxu1 }
0x297d   :  { %v2208_v62 = vadd.f32 %v2207_v61, %v3274_v28  ;;  %v1255_v28 = vrot.slane %v3403_v4, %v3512_v13  ;;  %v1961_v61 = vcombine.high %v1960_v8, %v1960_v8 }
0x297e   :  { %v2734_v12 = vpop.f32.mrf.mxu1 }
0x297f   :  { %2880 = vtanh.f32 %v2208_v62  ;;  %v2423_v0 = vmul.f32 -1.442695, %v2208_v62  ;;  %v1263_v16 = vrot.slane %v1255_v28, %v3512_v13  ;;  %v1256_v39 = vcombine.high %v1255_v28, %v1255_v28 }
0x2980   :  { %v1419_v62 = vrot.slane %v1411_v60, %v3522_v20  ;;  %v1693_v12 = vrot.slane %v1679_v10, %v3512_v13 }
0x2981   :  { %2882 = vpow2.f32 %v2423_v0  ;;  %v1274_v4 = vrot.slane %v1263_v16, %v3522_v20  ;;  %v1270_v40 = vrot.slane %v1256_v39, %v3512_v13  ;;  %v116_v16 = vld [vmem:[#allocation12] sm:$0xff] }
0x2982   :  { %v1701_v0 = vrot.slane %v1693_v12, %v3522_v20  ;;  %2741 = vmatprep.subr.mxu0 %v116_v16 }
0x2983   :  { %v1278_v36 = vrot.slane %v1270_v40, %v3522_v20  ;;  %2742 = vmatpush3.msra.mxu0 %v116_v16 }
0x298c   :  { %v2881_v63 = vpop.eup %2880 }
0x298d   :  { %2220 = vrot.lane.b32.xlu0 %v2881_v63, %s3048_s3 }
0x298e   :  { %v2883_v21 = vpop.eup %2882 }
0x298f   :  { %v2214_v3 = vadd.f32 1.0, %v2883_v21  ;;  %v1975_v21 = vrot.slane %v1961_v61, %v3512_v13 }
0x2991   :  { %2884 = vrcp.f32 %v2214_v3  ;;  %v1983_v3 = vrot.slane %v1975_v21, %v3522_v20 }
0x299e   :  { %v3516_v14 = vpop.eup %2884 }
0x299f   :  { %v2218_v25 = vmul.f32 %v3516_v14, %v3504_v59  ;;  %v1697_v59 = vrot.slane %v1686_v56, %v3522_v20 }
0x29ff   :  { %v2221_v15 = vpop.permute.xlu0 %2220 }
0x2a00   :  { %v2223_v19 = vmul.f32 %v3516_v14, %v2221_v15 }
0x2a02   :  { %2225 = vrot.lane.b32.xlu1 %v2223_v19, %s3048_s3 }
0x2a06   :  { %1279 = vrot.lane.b32.xlu1 %v1274_v4, %s3049_s18 }
0x2a0a   :  { %1561 = vrot.lane.b32.xlu1 %v1556_v54, %s3049_s18 }
0x2a0e   :  { %1843 = vrot.lane.b32.xlu1 %v1838_v30, %s3049_s18 }
0x2a12   :  { %2125 = vrot.lane.b32.xlu1 %v2120_v31, %s3049_s18 }
0x2a16   :  { %1281 = vrot.lane.b32.xlu1 %v1278_v36, %s3049_s18 }
0x2a1a   :  { %1563 = vrot.lane.b32.xlu1 %v1560_v42, %s3049_s18 }
0x2a1e   :  { %1845 = vrot.lane.b32.xlu1 %v1842_v9, %s3049_s18 }
0x2a22   :  { %2127 = vrot.lane.b32.xlu1 %v2124_v43, %s3049_s18 }
0x2a74   :  { %v2226_v44 = vpop.permute.xlu1 %2225 }
0x2a75   :  { %v2228_v46 = vadd.f32 %v2226_v44, %v2218_v25 }
0x2a77   :  { %2886 = vtanh.f32 %v2228_v46 }
0x2a78   :  { %v1280_v47 = vpop.permute.xlu1 %1279 }
0x2a79   :  { %1286 = vst.msk [vmem:[#allocation2] sm:$0x1] %vm1285_vm5, %v1280_v47 }
0x2a7c   :  { %v1562_v48 = vpop.permute.xlu1 %1561 }
0x2a7d   :  { %1567 = vst.msk [vmem:[#allocation2 + $0x2] sm:$0x1] %vm1285_vm5, %v1562_v48 }
0x2a80   :  { %v1844_v49 = vpop.permute.xlu1 %1843 }
0x2a81   :  { %1849 = vst.msk [vmem:[#allocation2 + $0x4] sm:$0x1] %vm1285_vm5, %v1844_v49 }
0x2a84   :  { %v2887_v53 = vpop.eup %2886  ;;  %v2126_v55 = vpop.permute.xlu1 %2125 }
0x2a85   :  { %2131 = vst.msk [vmem:[#allocation2 + $0x6] sm:$0x1] %vm1285_vm5, %v2126_v55  ;;  %2231 = vrot.lane.b32.xlu0 %v2887_v53, %s3048_s3 }
0x2a88   :  { %v1282_v57 = vpop.permute.xlu1 %1281 }
0x2a89   :  { %1287 = vst.msk [vmem:[#allocation2 + $0x8] sm:$0x1] %vm1285_vm5, %v1282_v57  ;;  %1420 = vrot.lane.b32.xlu0 %v1415_v35, %s3049_s18 }
0x2a8c   :  { %v1564_v27 = vpop.permute.xlu1 %1563 }
0x2a8d   :  { %1568 = vst.msk [vmem:[#allocation2 + $0xa] sm:$0x1] %vm1285_vm5, %v1564_v27  ;;  %1702 = vrot.lane.b32.xlu0 %v1697_v59, %s3049_s18 }
0x2a90   :  { %v1846_v11 = vpop.permute.xlu1 %1845 }
0x2a91   :  { %1850 = vst.msk [vmem:[#allocation2 + $0xc] sm:$0x1] %vm1285_vm5, %v1846_v11  ;;  %1984 = vrot.lane.b32.xlu0 %v1979_v45, %s3049_s18 }
0x2a94   :  { %v2128_v63 = vpop.permute.xlu1 %2127 }
0x2a95   :  { %2132 = vst.msk [vmem:[#allocation2 + $0xe] sm:$0x1] %vm1285_vm5, %v2128_v63  ;;  %1422 = vrot.lane.b32.xlu0 %v1419_v62, %s3049_s18 }
0x2a99   :  { %1704 = vrot.lane.b32.xlu0 %v1701_v0, %s3049_s18 }
0x2a9d   :  { %1986 = vrot.lane.b32.xlu0 %v1983_v3, %s3049_s18 }
0x2af7   :  { %v2232_v2 = vpop.permute.xlu0 %2231 }
0x2af8   :  { %v2234_v6 = vmul.f32 %v3516_v14, %v2232_v2 }
0x2afa   :  { %v2242_v28 = vrot.slane %v2234_v6, %v3512_v13 }
0x2afb   :  { %v1421_v15 = vpop.permute.xlu0 %1420 }
0x2afc   :  { %v2243_v18 = vcombine.high %v2242_v28, %v2242_v28  ;;  %v2250_v19 = vrot.slane %v2242_v28, %v3512_v13  ;;  %1426 = vst.msk [vmem:[#allocation2 + $0x1] sm:$0x1] %vm1285_vm5, %v1421_v15 }
0x2afe   :  { %v2261_v23 = vrot.slane %v2250_v19, %v3522_v20  ;;  %v2257_v14 = vrot.slane %v2243_v18, %v3512_v13 }
0x2aff   :  { %v1703_v24 = vpop.permute.xlu0 %1702 }
0x2b00   :  { %1708 = vst.msk [vmem:[#allocation2 + $0x3] sm:$0x1] %vm1285_vm5, %v1703_v24  ;;  %2266 = vrot.lane.b32.xlu0 %v2261_v23, %s3049_s18  ;;  %v2265_v4 = vrot.slane %v2257_v14, %v3522_v20 }
0x2b03   :  { %v1985_v22 = vpop.permute.xlu0 %1984 }
0x2b04   :  { %1990 = vst.msk [vmem:[#allocation2 + $0x5] sm:$0x1] %vm1285_vm5, %v1985_v22  ;;  %2268 = vrot.lane.b32.xlu0 %v2265_v4, %s3049_s18 }
0x2b07   :  { %v1423_v26 = vpop.permute.xlu0 %1422 }
0x2b08   :  { %1427 = vst.msk [vmem:[#allocation2 + $0x9] sm:$0x1] %vm1285_vm5, %v1423_v26 }
0x2b0b   :  { %v1705_v54 = vpop.permute.xlu0 %1704 }
0x2b0c   :  { %1709 = vst.msk [vmem:[#allocation2 + $0xb] sm:$0x1] %vm1285_vm5, %v1705_v54 }
0x2b0f   :  { %v1987_v13 = vpop.permute.xlu0 %1986 }
0x2b10   :  { %1991 = vst.msk [vmem:[#allocation2 + $0xd] sm:$0x1] %vm1285_vm5, %v1987_v13 }
0x2b72   :  { %v2267_v39 = vpop.permute.xlu0 %2266 }
0x2b73   :  { %2272 = vst.msk [vmem:[#allocation2 + $0x7] sm:$0x1] %vm1285_vm5, %v2267_v39 }
0x2b76   :  { %v2269_v5 = vpop.permute.xlu0 %2268 }
0x2b77   :  { %2273 = vst.msk [vmem:[#allocation2 + $0xf] sm:$0x1] %vm1285_vm5, %v2269_v5 }
0x2b7a   :  { %v2274_v20 = vld [vmem:[#allocation2] sm:$0xff] }
0x2b7b   :  { %2743 = vmatprep.mubr.msk.f32.mxu0 %vm322_vm4, %v2274_v20 }
0x2b7e   :  { %v2275_v30 = vld [vmem:[#allocation2 + $0x8] sm:$0xff] }
0x2b7f   :  { %2744 = vmatmul.mubr.msk.f32.vlgmr.msra.gmra.mxu0 %vm322_vm4, %v2275_v30 }
0x2c3f   :  { %v2745_v31 = vpop.f32.mrf.mxu0 }
0x2c40   :  { %v2360_v40 = vadd.f32 %v2745_v31, %v2424_v29 }
0x2c41   :  { %v2354_v32 = vpop.f32.mrf.mxu0 }
0x2c42   :  { %2364 = vst.msk [vmem:[#allocation14 + $0x8] sm:$0xff] %vm135_vm1, %v2360_v40  ;;  %v2355_v36 = vadd.f32 %v2424_v29, %v2354_v32 }
0x2c44   :  { %2363 = vst.msk [vmem:[#allocation14] sm:$0xff] %vm135_vm1, %v2355_v36 }
0x2c45   :  { %3019 = shalt.err (!%p3016_p6)
}
0x2c46   :  { %2376 = dma.vmem_to_hbm [thread:$0]  %s2371_s23, 256, %s3624_s9, [#allocation5], %s3040_s14, %s3040_s14, %s3041_s15  }
0x2c47   :  { %3036 = dma.done.wait [#allocation5], 256  }
0x2c48   :  { %3037 = vsyncadd [#allocation5], 4294967040 }
0x2c49   :  { %2380 = vsyncpa [#allocation4], 1 }
0x2c4a   :  { %2381 = vsyncpa [#allocation7], 1 }
0x2c4b   :  { %2382 = vsyncpa [#allocation10], 1 }
0x2c4c   :  { %2383 = vsyncpa [#allocation13], 1 }
0x2c4d   :  { %2384 = vsyncpa [#allocation5], 1 }

</bundles_post_ra>
